<compile_context>
chip_gen: v5e
topology: v5e:2x2
jax: 0.10.0
libtpu: 0.0.40
codegen_flags: <defaults>
</compile_context>

<pallas_src>
import functools

import jax
import jax.numpy as jnp
from jax.experimental import pallas as pl
from jax.experimental.pallas import tpu as pltpu

PI = 3.14159265359
_HALF_PI = 1.5707963267948966

# Cephes single-precision minimax coefficients on [-pi/4, pi/4].
_S1, _S2, _S3 = -1.6666654611e-1, 8.3321608736e-3, -1.9515295891e-4
_C1, _C2, _C3 = 4.166664568298827e-2, -1.388731625493765e-3, 2.443315711809948e-5


def _round_up(n, m):
    return ((n + m - 1) // m) * m


def _cdiv(a, b):
    return (a + b - 1) // b


def _sincos_2pi(p):
    """(sin(2*pi*p), cos(2*pi*p)) for arbitrary-magnitude p, all VPU ops.

    Exact mod-1 range reduction in "turns" (Sterbenz-exact subtraction),
    quadrant fold, then shared degree-7/8 minimax polynomials on
    [-pi/4, pi/4].  floor(x + 0.5) is used as round-to-nearest (guaranteed
    lowering); any off-by-one near ties only shifts the residual marginally
    past pi/4 where the polynomials remain accurate.
    """
    t = p - jnp.floor(p + 0.5)           # turns, ~[-0.5, 0.5]
    u = 4.0 * t
    k = jnp.floor(u + 0.5)               # quadrant, in {-2,-1,0,1,2}
    r = (u - k) * _HALF_PI               # residual angle, ~[-pi/4, pi/4]
    z = r * r
    sin_r = r + r * (z * (_S1 + z * (_S2 + z * _S3)))
    cos_r = 1.0 + z * (-0.5 + z * (_C1 + z * (_C2 + z * _C3)))
    odd = (k == 1.0) | (k == -1.0)
    sin_neg = (k == 2.0) | (k == -2.0) | (k == -1.0)
    cos_neg = (k == 1.0) | (k == 2.0) | (k == -2.0)
    s = jnp.where(odd, cos_r, sin_r)
    c = jnp.where(odd, sin_r, cos_r)
    s = jnp.where(sin_neg, -s, s)
    c = jnp.where(cos_neg, -c, c)
    return s, c


def _pirff_kernel(xT_ref, col_ref, w0_ref, w1_ref, w2_ref, o_ref,
                  *, nf, h1, h2, nout):
    # x^T tile: (2, TB).  torch.remainder(x, 1) == x - floor(x), computed on
    # the un-broadcast (2, TB) rows so floor/sub touch only 2 sublanes.
    xT = xT_ref[...]
    xm = xT - jnp.floor(xT)

    # Packed column params, sliced at static sublane offsets (all (n, 1)).
    off = 0
    fbx = col_ref[off:off + nf, :]; off += nf        # b[0, :]
    fby = col_ref[off:off + nf, :]; off += nf        # b[1, :]
    b0 = col_ref[off:off + h1, :]; off += h1
    b1 = col_ref[off:off + h2, :]; off += h2
    b2 = col_ref[off:off + nout, :]

    # K=2 Fourier projection on the VPU as two broadcast FMAs, in "turns"
    # (2*pi is applied inside _sincos_2pi's reduced-domain evaluation):
    #   p[f, n] = b[0, f] * xm[0, n] + b[1, f] * xm[1, n]
    p = fbx * xm[0:1, :] + fby * xm[1:2, :]           # (nf, TB)

    s, c = _sincos_2pi(p)                             # bounded-domain sincos

    # Single K=2*nf dot: sin/cos features stacked on the sublane axis at a
    # multiple-of-8 boundary (cheap concat, no relayout).
    feat = jnp.concatenate([s, c], axis=0)            # (2*nf, TB)
    h = jnp.dot(w0_ref[...], feat, preferred_element_type=jnp.float32) + b0
    h = jnp.maximum(h, 0.0)
    h = jnp.dot(w1_ref[...], h, preferred_element_type=jnp.float32) + b1
    h = jnp.maximum(h, 0.0)
    y = jnp.dot(w2_ref[...], h, preferred_element_type=jnp.float32) + b2
    o_ref[...] = jnp.tanh(y)


def _choose_tile(B, tb_max):
    """Pick (lanes per grid step, number of grid steps).

    Large tiles amortize the per-step pipeline overhead; the grid is kept at
    >= 2 steps whenever >256 lanes of work exist so v7x's two TensorCores
    both receive work.  Tile width is always a multiple of 128.
    """
    tb_max = max(128, _round_up(tb_max, 128))
    b128 = _round_up(max(B, 1), 128)
    if b128 <= 256:                       # too little work to split
        return b128, 1
    n_steps = max(2, _cdiv(b128, tb_max))
    tb = min(_round_up(_cdiv(b128, n_steps), 128), tb_max)
    n_steps = _cdiv(B, tb)
    return tb, n_steps


def pirff_forward_t(xT, params, *, tb_max=4096):
    """Native (transposed) layout: xT (2, B) f32 -> (nout, B) f32.

    Batch stays on the lane axis end-to-end -> no HBM transpose passes.
    Prefer this entry point for large B.
    """
    fb, w0, b0, w1, b1, w2, b2 = params
    B = xT.shape[1]
    nf = fb.shape[1]
    h1 = w0.shape[1]
    h2 = w1.shape[1]
    nout = w2.shape[1]

    # One-time parameter re-layout (wrapper side).  The five small column
    # parameters (2 Fourier rows + 3 biases) are packed into one (., 1)
    # operand -> a single DMA descriptor.
    colpack = jnp.concatenate(
        [fb[0][:, None], fb[1][:, None], b0.T, b1.T, b2.T], axis=0)
    w0T = jnp.transpose(w0)               # (h1, 2*nf)
    w1T = jnp.transpose(w1)               # (h2, h1)
    w2T = jnp.transpose(w2)               # (nout, h2)

    tb, n_steps = _choose_tile(B, tb_max)
    b_pad = tb * n_steps
    xTp = xT if b_pad == B else jnp.pad(xT, ((0, 0), (0, b_pad - B)))

    resident = lambda i: (0, 0)           # weights never re-DMA'd across steps
    kernel = functools.partial(_pirff_kernel, nf=nf, h1=h1, h2=h2, nout=nout)
    yT = pl.pallas_call(
        kernel,
        out_shape=jax.ShapeDtypeStruct((nout, b_pad), jnp.float32),
        grid=(n_steps,),
        in_specs=[
            pl.BlockSpec((2, tb), lambda i: (0, i)),      # x^T batch tile
            pl.BlockSpec(colpack.shape, resident),        # packed columns
            pl.BlockSpec(w0T.shape, resident),
            pl.BlockSpec(w1T.shape, resident),
            pl.BlockSpec(w2T.shape, resident),
        ],
        out_specs=pl.BlockSpec((nout, tb), lambda i: (0, i)),
        compiler_params=pltpu.CompilerParams(
            dimension_semantics=("parallel",)),
    )(xTp, colpack, w0T, w1T, w2T)
    return yT[:, :B]


def pirff_forward(x, params, *, tb_max=4096):
    """PyTorch-layout wrapper: x (B, 2) -> (B, nout).  The two transposes are
    API plumbing only; under jit they fuse with the pad / final slice."""
    return jnp.transpose(
        pirff_forward_t(jnp.transpose(x), params, tb_max=tb_max))


def init_params(key, nfeat, dim_mlp_layers, f_scale):
    # Deterministic synthetic parameters (shapes mirror the PyTorch module;
    # weights stored (in, out), biases (1, out) -> same math as nn.Linear).
    ks = jax.random.split(key, 1 + 2 * (len(dim_mlp_layers) - 1))
    fb = jax.random.normal(ks[0], (2, nfeat), jnp.float32) * f_scale
    params = [fb]
    ki = 1
    for l in range(len(dim_mlp_layers) - 1):
        n_in, n_out = dim_mlp_layers[l], dim_mlp_layers[l + 1]
        bound = 1.0 / jnp.sqrt(n_in)
        w = jax.random.uniform(ks[ki], (n_in, n_out), jnp.float32, -bound, bound)
        b = jax.random.uniform(ks[ki + 1], (1, n_out), jnp.float32, -bound, bound)
        params += [w, b]
        ki += 2
    return tuple(params)


def reference_forward(x, params):
    fb, w0, b0, w1, b1, w2, b2 = params
    xm = x - jnp.floor(x)
    proj = (2.0 * PI * xm) @ fb
    feat = jnp.concatenate([jnp.sin(proj), jnp.cos(proj)], axis=-1)
    h = jnp.maximum(feat @ w0 + b0, 0.0)
    h = jnp.maximum(h @ w1 + b1, 0.0)
    return jnp.tanh(h @ w2 + b2)


if __name__ == "__main__":
    key = jax.random.PRNGKey(0)
    k_x, k_p = jax.random.split(key)

    # Module-consistent shapes: coordinates in R^2, 32 Fourier features
    # (-> 64-dim RFF embedding), MLP [64, 32, 32, 2].
    nfeat = 32
    f_scale = 10.0
    dim_mlp_layers = [2 * nfeat, 32, 32, 2]
    B = 1000   # not a tile multiple: exercises lane padding + a 2-step grid

    x = jax.random.normal(k_x, (B, 2), jnp.float32) * 2.0
    params = init_params(k_p, nfeat, dim_mlp_layers, f_scale)

    fwd = jax.jit(functools.partial(pirff_forward, params=params))
    out = jax.block_until_ready(fwd(x))
    ref = reference_forward(x, params)

    assert out.shape == (B, 2)
    # The kernel's mod-1 + minimax sincos is more accurate than the library
    # sin/cos the reference applies to O(100)-magnitude arguments; tolerance
    # covers the reference's own f32 argument-rounding error propagated
    # through the MLP (outputs are tanh-bounded to [-1, 1]).
    assert jnp.allclose(out, ref, atol=2e-4, rtol=1e-3)

    print("KERNEL_OK")
</pallas_src>

<mosaic_0001>
module attributes {stable_mosaic.version = 11 : i64} {
  func.func @_pirff_kernel(%arg0: i32, %arg1: memref<2x512xf32, #tpu.memory_space<vmem>>, %arg2: memref<130x1xf32, #tpu.memory_space<vmem>>, %arg3: memref<32x64xf32, #tpu.memory_space<vmem>>, %arg4: memref<32x32xf32, #tpu.memory_space<vmem>>, %arg5: memref<2x32xf32, #tpu.memory_space<vmem>>, %arg6: memref<2x512xf32, #tpu.memory_space<vmem>>) attributes {dimension_semantics = [#tpu.dimension_semantics<parallel>], iteration_bounds = array<i64: 2>, scalar_prefetch = 0 : i64, scratch_operands = 0 : i64, tpu.core_type = #tpu.core_type<tc>, window_params = [{transform_indices = @transform_0, window_bounds = array<i64: 2, 512>}, {pipeline_mode = #tpu.pipeline_mode<synchronous>, transform_indices = @transform_1, window_bounds = array<i64: 130, 1>}, {pipeline_mode = #tpu.pipeline_mode<synchronous>, transform_indices = @transform_2, window_bounds = array<i64: 32, 64>}, {pipeline_mode = #tpu.pipeline_mode<synchronous>, transform_indices = @transform_3, window_bounds = array<i64: 32, 32>}, {pipeline_mode = #tpu.pipeline_mode<synchronous>, transform_indices = @transform_4, window_bounds = array<i64: 2, 32>}, {transform_indices = @transform_5, window_bounds = array<i64: 2, 512>}]} {
    %c0 = arith.constant 0 : index
    %c0_0 = arith.constant 0 : index
    %0 = vector.load %arg1[%c0, %c0_0] : memref<2x512xf32, #tpu.memory_space<vmem>>, vector<2x512xf32>
    %1 = math.floor %0 : vector<2x512xf32>
    %2 = arith.subf %0, %1 : vector<2x512xf32>
    %c0_1 = arith.constant 0 : index
    %c0_2 = arith.constant 0 : index
    %3 = vector.load %arg2[%c0_1, %c0_2] : memref<130x1xf32, #tpu.memory_space<vmem>>, vector<32x1xf32>
    %c32 = arith.constant 32 : index
    %c0_3 = arith.constant 0 : index
    %4 = vector.load %arg2[%c32, %c0_3] : memref<130x1xf32, #tpu.memory_space<vmem>>, vector<32x1xf32>
    %c64 = arith.constant 64 : index
    %c0_4 = arith.constant 0 : index
    %5 = vector.load %arg2[%c64, %c0_4] : memref<130x1xf32, #tpu.memory_space<vmem>>, vector<32x1xf32>
    %c96 = arith.constant 96 : index
    %c0_5 = arith.constant 0 : index
    %6 = vector.load %arg2[%c96, %c0_5] : memref<130x1xf32, #tpu.memory_space<vmem>>, vector<32x1xf32>
    %c128 = arith.constant 128 : index
    %c0_6 = arith.constant 0 : index
    %7 = vector.load %arg2[%c128, %c0_6] : memref<130x1xf32, #tpu.memory_space<vmem>>, vector<2x1xf32>
    %8 = vector.extract_strided_slice %2 {offsets = [0, 0], sizes = [1, 512], strides = [1, 1]} : vector<2x512xf32> to vector<1x512xf32>
    %9 = vector.broadcast %3 : vector<32x1xf32> to vector<32x512xf32>
    %10 = vector.broadcast %8 : vector<1x512xf32> to vector<32x512xf32>
    %11 = arith.mulf %9, %10 : vector<32x512xf32>
    %12 = vector.extract_strided_slice %2 {offsets = [1, 0], sizes = [1, 512], strides = [1, 1]} : vector<2x512xf32> to vector<1x512xf32>
    %13 = vector.broadcast %4 : vector<32x1xf32> to vector<32x512xf32>
    %14 = vector.broadcast %12 : vector<1x512xf32> to vector<32x512xf32>
    %15 = arith.mulf %13, %14 : vector<32x512xf32>
    %16 = arith.addf %11, %15 : vector<32x512xf32>
    %cst = arith.constant 5.000000e-01 : f32
    %17 = vector.broadcast %cst : f32 to vector<32x512xf32>
    %18 = arith.addf %16, %17 : vector<32x512xf32>
    %19 = math.floor %18 : vector<32x512xf32>
    %20 = arith.subf %16, %19 : vector<32x512xf32>
    %cst_7 = arith.constant 4.000000e+00 : f32
    %21 = vector.broadcast %cst_7 : f32 to vector<32x512xf32>
    %22 = arith.mulf %21, %20 : vector<32x512xf32>
    %cst_8 = arith.constant 5.000000e-01 : f32
    %23 = vector.broadcast %cst_8 : f32 to vector<32x512xf32>
    %24 = arith.addf %22, %23 : vector<32x512xf32>
    %25 = math.floor %24 : vector<32x512xf32>
    %26 = arith.subf %22, %25 : vector<32x512xf32>
    %cst_9 = arith.constant 1.57079637 : f32
    %27 = vector.broadcast %cst_9 : f32 to vector<32x512xf32>
    %28 = arith.mulf %26, %27 : vector<32x512xf32>
    %29 = arith.mulf %28, %28 : vector<32x512xf32>
    %cst_10 = arith.constant -1.95152956E-4 : f32
    %30 = vector.broadcast %cst_10 : f32 to vector<32x512xf32>
    %31 = arith.mulf %29, %30 : vector<32x512xf32>
    %cst_11 = arith.constant 0.00833216123 : f32
    %32 = vector.broadcast %cst_11 : f32 to vector<32x512xf32>
    %33 = arith.addf %32, %31 : vector<32x512xf32>
    %34 = arith.mulf %29, %33 : vector<32x512xf32>
    %cst_12 = arith.constant -0.166666552 : f32
    %35 = vector.broadcast %cst_12 : f32 to vector<32x512xf32>
    %36 = arith.addf %35, %34 : vector<32x512xf32>
    %37 = arith.mulf %29, %36 : vector<32x512xf32>
    %38 = arith.mulf %28, %37 : vector<32x512xf32>
    %39 = arith.addf %28, %38 : vector<32x512xf32>
    %cst_13 = arith.constant 2.44331568E-5 : f32
    %40 = vector.broadcast %cst_13 : f32 to vector<32x512xf32>
    %41 = arith.mulf %29, %40 : vector<32x512xf32>
    %cst_14 = arith.constant -0.00138873165 : f32
    %42 = vector.broadcast %cst_14 : f32 to vector<32x512xf32>
    %43 = arith.addf %42, %41 : vector<32x512xf32>
    %44 = arith.mulf %29, %43 : vector<32x512xf32>
    %cst_15 = arith.constant 0.0416666456 : f32
    %45 = vector.broadcast %cst_15 : f32 to vector<32x512xf32>
    %46 = arith.addf %45, %44 : vector<32x512xf32>
    %47 = arith.mulf %29, %46 : vector<32x512xf32>
    %cst_16 = arith.constant -5.000000e-01 : f32
    %48 = vector.broadcast %cst_16 : f32 to vector<32x512xf32>
    %49 = arith.addf %48, %47 : vector<32x512xf32>
    %50 = arith.mulf %29, %49 : vector<32x512xf32>
    %cst_17 = arith.constant 1.000000e+00 : f32
    %51 = vector.broadcast %cst_17 : f32 to vector<32x512xf32>
    %52 = arith.addf %51, %50 : vector<32x512xf32>
    %cst_18 = arith.constant 1.000000e+00 : f32
    %53 = vector.broadcast %cst_18 : f32 to vector<32x512xf32>
    %54 = arith.cmpf oeq, %25, %53 : vector<32x512xf32>
    %cst_19 = arith.constant -1.000000e+00 : f32
    %55 = vector.broadcast %cst_19 : f32 to vector<32x512xf32>
    %56 = arith.cmpf oeq, %25, %55 : vector<32x512xf32>
    %57 = arith.ori %54, %56 : vector<32x512xi1>
    %cst_20 = arith.constant 2.000000e+00 : f32
    %58 = vector.broadcast %cst_20 : f32 to vector<32x512xf32>
    %59 = arith.cmpf oeq, %25, %58 : vector<32x512xf32>
    %cst_21 = arith.constant -2.000000e+00 : f32
    %60 = vector.broadcast %cst_21 : f32 to vector<32x512xf32>
    %61 = arith.cmpf oeq, %25, %60 : vector<32x512xf32>
    %62 = arith.ori %59, %61 : vector<32x512xi1>
    %cst_22 = arith.constant -1.000000e+00 : f32
    %63 = vector.broadcast %cst_22 : f32 to vector<32x512xf32>
    %64 = arith.cmpf oeq, %25, %63 : vector<32x512xf32>
    %65 = arith.ori %62, %64 : vector<32x512xi1>
    %cst_23 = arith.constant 1.000000e+00 : f32
    %66 = vector.broadcast %cst_23 : f32 to vector<32x512xf32>
    %67 = arith.cmpf oeq, %25, %66 : vector<32x512xf32>
    %cst_24 = arith.constant 2.000000e+00 : f32
    %68 = vector.broadcast %cst_24 : f32 to vector<32x512xf32>
    %69 = arith.cmpf oeq, %25, %68 : vector<32x512xf32>
    %70 = arith.ori %67, %69 : vector<32x512xi1>
    %cst_25 = arith.constant -2.000000e+00 : f32
    %71 = vector.broadcast %cst_25 : f32 to vector<32x512xf32>
    %72 = arith.cmpf oeq, %25, %71 : vector<32x512xf32>
    %73 = arith.ori %70, %72 : vector<32x512xi1>
    %74 = arith.select %57, %52, %39 : vector<32x512xi1>, vector<32x512xf32>
    %75 = arith.select %57, %39, %52 : vector<32x512xi1>, vector<32x512xf32>
    %cst_26 = arith.constant 0.000000e+00 : f32
    %76 = vector.broadcast %cst_26 : f32 to vector<32x512xf32>
    %77 = arith.subf %76, %74 : vector<32x512xf32>
    %78 = arith.select %65, %77, %74 : vector<32x512xi1>, vector<32x512xf32>
    %cst_27 = arith.constant 0.000000e+00 : f32
    %79 = vector.broadcast %cst_27 : f32 to vector<32x512xf32>
    %80 = arith.subf %79, %75 : vector<32x512xf32>
    %81 = arith.select %73, %80, %75 : vector<32x512xi1>, vector<32x512xf32>
    %82 = tpu.concatenate %78, %81 in 0 : vector<32x512xf32>, vector<32x512xf32> -> vector<64x512xf32>
    %c0_28 = arith.constant 0 : index
    %c0_29 = arith.constant 0 : index
    %83 = vector.load %arg3[%c0_28, %c0_29] : memref<32x64xf32, #tpu.memory_space<vmem>>, vector<32x64xf32>
    %cst_30 = arith.constant dense<0.000000e+00> : vector<32x512xf32>
    %84 = tpu.matmul %83, %82, %cst_30 {dimension_numbers = #tpu.dot_dimension_numbers<[1], [0], [0], [1], [0, 0, 1, 1], [], []>} : vector<32x64xf32>, vector<64x512xf32>, vector<32x512xf32> -> vector<32x512xf32>
    %85 = vector.broadcast %5 : vector<32x1xf32> to vector<32x512xf32>
    %86 = arith.addf %84, %85 : vector<32x512xf32>
    %cst_31 = arith.constant 0.000000e+00 : f32
    %87 = vector.broadcast %cst_31 : f32 to vector<32x512xf32>
    %88 = arith.maximumf %86, %87 : vector<32x512xf32>
    %c0_32 = arith.constant 0 : index
    %c0_33 = arith.constant 0 : index
    %89 = vector.load %arg4[%c0_32, %c0_33] : memref<32x32xf32, #tpu.memory_space<vmem>>, vector<32x32xf32>
    %cst_34 = arith.constant dense<0.000000e+00> : vector<32x512xf32>
    %90 = tpu.matmul %89, %88, %cst_34 {dimension_numbers = #tpu.dot_dimension_numbers<[1], [0], [0], [1], [0, 0, 1, 1], [], []>} : vector<32x32xf32>, vector<32x512xf32>, vector<32x512xf32> -> vector<32x512xf32>
    %91 = vector.broadcast %6 : vector<32x1xf32> to vector<32x512xf32>
    %92 = arith.addf %90, %91 : vector<32x512xf32>
    %cst_35 = arith.constant 0.000000e+00 : f32
    %93 = vector.broadcast %cst_35 : f32 to vector<32x512xf32>
    %94 = arith.maximumf %92, %93 : vector<32x512xf32>
    %c0_36 = arith.constant 0 : index
    %c0_37 = arith.constant 0 : index
    %95 = vector.load %arg5[%c0_36, %c0_37] : memref<2x32xf32, #tpu.memory_space<vmem>>, vector<2x32xf32>
    %cst_38 = arith.constant dense<0.000000e+00> : vector<2x512xf32>
    %96 = tpu.matmul %95, %94, %cst_38 {dimension_numbers = #tpu.dot_dimension_numbers<[1], [0], [0], [1], [0, 0, 1, 1], [], []>} : vector<2x32xf32>, vector<32x512xf32>, vector<2x512xf32> -> vector<2x512xf32>
    %97 = vector.broadcast %7 : vector<2x1xf32> to vector<2x512xf32>
    %98 = arith.addf %96, %97 : vector<2x512xf32>
    %99 = math.tanh %98 : vector<2x512xf32>
    %c0_39 = arith.constant 0 : index
    %c0_40 = arith.constant 0 : index
    %100 = vector.load %arg6[%c0_39, %c0_40] : memref<2x512xf32, #tpu.memory_space<vmem>>, vector<2x512xf32>
    tpu.vector_store %arg6[%c0_39, %c0_40], %99 {strides = array<i32>} : memref<2x512xf32, #tpu.memory_space<vmem>>, vector<2x512xf32>,
    return
  }
  func.func @transform_0(%arg0: i32) -> (i32, i32) {
    %c0_i32 = arith.constant 0 : i32
    %c0_i32_0 = arith.constant 0 : i32
    return %c0_i32, %arg0 : i32, i32
  }
  func.func @transform_1(%arg0: i32) -> (i32, i32) {
    %c0_i32 = arith.constant 0 : i32
    %c0_i32_0 = arith.constant 0 : i32
    %c0_i32_1 = arith.constant 0 : i32
    return %c0_i32, %c0_i32_0 : i32, i32
  }
  func.func @transform_2(%arg0: i32) -> (i32, i32) {
    %c0_i32 = arith.constant 0 : i32
    %c0_i32_0 = arith.constant 0 : i32
    %c0_i32_1 = arith.constant 0 : i32
    return %c0_i32, %c0_i32_0 : i32, i32
  }
  func.func @transform_3(%arg0: i32) -> (i32, i32) {
    %c0_i32 = arith.constant 0 : i32
    %c0_i32_0 = arith.constant 0 : i32
    %c0_i32_1 = arith.constant 0 : i32
    return %c0_i32, %c0_i32_0 : i32, i32
  }
  func.func @transform_4(%arg0: i32) -> (i32, i32) {
    %c0_i32 = arith.constant 0 : i32
    %c0_i32_0 = arith.constant 0 : i32
    %c0_i32_1 = arith.constant 0 : i32
    return %c0_i32, %c0_i32_0 : i32, i32
  }
  func.func @transform_5(%arg0: i32) -> (i32, i32) {
    %c0_i32 = arith.constant 0 : i32
    %c0_i32_0 = arith.constant 0 : i32
    return %c0_i32, %arg0 : i32, i32
  }
}

</mosaic_0001>

<bundles_post_ra>
// kernel: pirff_forward.1
= control target key start
LH: loop header
LB: loop body
LE: loop exit
PB: predicated region body
PF: predicated region fallthrough
CT: control target
= control target key end

     0   :  { %10 = vsyncpa [#allocation3], 0  ;;  %s3019_s0 = inlined_call_operand.vmem [shape: f32[2,1024], index: 0, kind: input, shape index: {}]   ;;  %s3020_s1 = inlined_call_operand.hbm [shape: f32[130,1], index: 1, kind: input, shape index: {}]   ;;  %s3021_s2 = inlined_call_operand.vmem [shape: f32[32,64], index: 2, kind: input, shape index: {}]   ;;  %s3022_s3 = inlined_call_operand.hbm [shape: f32[32,32], index: 3, kind: input, shape index: {}]   ;;  %s3023_s4 = inlined_call_operand.vmem [shape: f32[2,32], index: 4, kind: input, shape index: {}]   ;;  %s3024_s5 = inlined_call_operand.vmem [shape: f32[2,1024], index: 5, kind: output, shape index: {}]  }
   0x1   :  { %11 = vsyncpa [#allocation5], 0  ;;  %s1748_s18 = smov 0  }
   0x2 LB: > { %s169_s21 = sshll.u32 %s3020_s1, 4  ;;  %s1543_s22 = sadd.s32 4294967295, %s1711_s18   ;;  %s1711_s18 = sphi %s1748_s18, %s17_s18   ;;  %s170_s21 = int_to_ptr.hbm [resolvable:$true] %s169_s21 }
   0x3   : > { %p1545_p0 = scmp.ge.s32.totalorder %s1711_s18, 1  ;;  %p158_p1 = scmp.lt.s32.totalorder %s1711_s18, 3 }
   0x4   : > { %p1761_p2 = scmp.eq.s32.totalorder %s1543_s22, 0  ;;  %s1713_s25 = smov [#allocation2]  }
   0x5   : > { %p1765_p3 = pnand %p1545_p0, %p158_p1  ;;  %s171_s26 = sshll.u32 %s1713_s25, 4  ;;  %s172_s26 = int_to_ptr.vmem [resolvable:$true] %s171_s26 }
   0x6   : > { %s186_s29 = sshll.u32 %s3022_s3, 4  ;;  %s1714_s30 = smov [#allocation4]   ;;  %s187_s29 = int_to_ptr.hbm [resolvable:$true] %s186_s29 }
   0x7   : > { %p1602_p4 = pneg %p1765_p3  ;;  %s188_s6 = sshll.u32 %s1714_s30, 4  ;;  %s189_s6 = int_to_ptr.vmem [resolvable:$true] %s188_s6 }
   0x8   : > { %s1715_s7 = smov 128   ;;  %s1716_s8 = smov 8  }
   0x9   : > { %p1603_p5 = pnand %p1761_p2, %p1602_p4  ;;  %216 = sbr.rel (%p1765_p3) target bundleno = 787 (0x313), region = 40 }
   0xb   : > { %1605 = dma.hbm_to_vmem [thread:$0]  (!%p1603_p5), %s170_s21, 2176, %s172_s26, [#allocation3], %s1715_s7, %s1715_s7, %s1716_s8  }
   0xc   : > { %1608 = dma.hbm_to_vmem [thread:$0]  (!%p1603_p5), %s187_s29, 512, %s189_s6, [#allocation5], %s1715_s7, %s1715_s7, %s1716_s8  }
   0xe   : > { %1702 = dma.done.wait (%p1761_p2), [#allocation3], 2176  }
   0xf   : > { %1704 = vsyncadd (%p1761_p2), [#allocation3], 4294965120 }
  0x10   : > { %1706 = dma.done.wait (%p1761_p2), [#allocation5], 512  }
  0x11   : > { %1708 = vsyncadd (%p1761_p2), [#allocation5], 4294966784  ;;  %v1717_v0 = vmov 0   ;;  %v268_v1 = vld [vmem:[#allocation2 + $0x18] sm:$0xff]  ;;  %v267_v2 = vld [vmem:[#allocation2 + $0x10] sm:$0xff]  ;;  %s1552_s9 = sshll.u32 %s1543_s22, 2 }
  0x12   : > { %1628 = vset.pattern.permute.xlu2 %v1717_v0  ;;  %1627 = vset.pattern.permute.xlu1 %v1717_v0  ;;  %v266_v3 = vld [vmem:[#allocation2 + $0x8] sm:$0xff]  ;;  %v272_v4 = vld [vmem:[#allocation2 + $0x38] sm:$0xff]  ;;  %v271_v5 = vld [vmem:[#allocation2 + $0x30] sm:$0xff]  ;;  %p251_p6 = scmp.lt.s32.totalorder %s1552_s9, 7 }
  0x13   : > { %1626 = vset.pattern.permute.xlu0 %v1717_v0  ;;  %294 = vperm.xlu1 %1627, %v267_v2   ;;  %v270_v6 = vld [vmem:[#allocation2 + $0x28] sm:$0xff]  ;;  %v269_v7 = vld [vmem:[#allocation2 + $0x20] sm:$0xff]  ;;  %v276_v9 = vld [vmem:[#allocation2 + $0x58] sm:$0xff] }
  0x14   : > { %299 = vperm.xlu0 %1626, %v268_v1   ;;  %289 = vperm.xlu2 %1628, %v266_v3   ;;  %v265_v8 = vld [vmem:[#allocation2] sm:$0xff]  ;;  %v274_v10 = vld [vmem:[#allocation2 + $0x48] sm:$0xff]  ;;  %v275_v11 = vld [vmem:[#allocation2 + $0x50] sm:$0xff]  ;;  %s3298_s9 = smov (!%p251_p6, %s1552_s9), 7 }
  0x15   : > { %v273_v12 = vld [vmem:[#allocation2 + $0x40] sm:$0xff]  ;;  %v279_v13 = vld [vmem:[#allocation2 + $0x70] sm:$0xff]  ;;  %v280_v14 = vld [vmem:[#allocation2 + $0x78] sm:$0xff]  ;;  %s1553_s10 = sshll.u32 %s3298_s9, 1 }
  0x16   : > { %v278_v15 = vld [vmem:[#allocation2 + $0x68] sm:$0xff]  ;;  %v281_v16 = vld [vmem:[#allocation2 + $0x80] sm:$0x3]  ;;  %s254_s13 = scalar_lea.vmem %s3019_s0, %s1553_s10  ;;  %s260_s27 = scalar_lea.vmem %s3024_s5, %s1553_s10 }
  0x17   : > { %v277_v17 = vld [vmem:[#allocation2 + $0x60] sm:$0xff] }
  0x18   : > { %v262_v18 = vld [vmem:[%s254_s13] sm:$0xff] }
  0x19   : > { %v263_v19 = vfloor.f32 %v262_v18 }
  0x1b   : > { %343 = vperm.xlu1 %1627, %v271_v5   ;;  %v264_v20 = vsub.f32 %v262_v18, %v263_v19 }
  0x1c   : > { %348 = vperm.xlu0 %1626, %v272_v4   ;;  %338 = vperm.xlu2 %1628, %v270_v6  }
  0x1d   : > { %v303_v22 = vperm.slane %v264_v20, 0  ;;  %v304_v23 = vperm.slane %v264_v20, 2  ;;  %v305_v24 = vperm.slane %v264_v20, 4  ;;  %v351_v25 = vperm.slane %v264_v20, 1 }
  0x1e   : > { %v352_v26 = vperm.slane %v264_v20, 3  ;;  %v353_v27 = vperm.slane %v264_v20, 5  ;;  %v306_v28 = vperm.slane %v264_v20, 6  ;;  %v354_v31 = vperm.slane %v264_v20, 7 }
  0x1f   : > { %v1796_v29 = vperm.slane %v303_v22, 0  ;;  %v1798_v30 = vperm.slane %v304_v23, 0  ;;  %v1800_v32 = vperm.slane %v305_v24, 0  ;;  %v1802_v33 = vperm.slane %v351_v25, 1 }
  0x20   : > { %v1804_v34 = vperm.slane %v352_v26, 1  ;;  %v1806_v35 = vperm.slane %v353_v27, 1  ;;  %v1808_v36 = vperm.slane %v306_v28, 0  ;;  %v1812_v40 = vperm.slane %v354_v31, 1 }
  0x23   : > { %333 = vperm.xlu1 %1627, %v269_v7  }
  0x24   : > { %284 = vperm.xlu0 %1626, %v265_v8   ;;  %1040 = vperm.xlu2 %1628, %v276_v9  }
  0x2b   : > { %1030 = vperm.xlu1 %1627, %v274_v10  }
  0x2c   : > { %1035 = vperm.xlu0 %1626, %v275_v11   ;;  %1025 = vperm.xlu2 %1628, %v273_v12  }
  0x33   : > { %1204 = vperm.xlu1 %1627, %v279_v13  }
  0x34   : > { %1209 = vperm.xlu0 %1626, %v280_v14   ;;  %1199 = vperm.xlu2 %1628, %v278_v15  }
  0x3b   : > { %1360 = vperm.xlu1 %1627, %v281_v16  }
  0x3c   : > { %1194 = vperm.xlu0 %1626, %v277_v17  }
  0x6e   : > { %v290_v21 = vpop.permute.xlu2 %289 }
  0x6f   : > { %v319_v37 = vmul.f32 %v1796_v29, %v290_v21  ;;  %v320_v38 = vmul.f32 %v1798_v30, %v290_v21  ;;  %v321_v41 = vmul.f32 %v1800_v32, %v290_v21  ;;  %v322_v45 = vmul.f32 %v1808_v36, %v290_v21 }
  0x76   : > { %v339_v39 = vpop.permute.xlu2 %338 }
  0x77   : > { %v367_v42 = vmul.f32 %v1802_v33, %v339_v39  ;;  %v368_v43 = vmul.f32 %v1804_v34, %v339_v39  ;;  %v369_v44 = vmul.f32 %v1806_v35, %v339_v39  ;;  %v370_v46 = vmul.f32 %v1812_v40, %v339_v39 }
  0x79   : > { %v383_v47 = vadd.f32 %v367_v42, %v319_v37  ;;  %v384_v48 = vadd.f32 %v368_v43, %v320_v38  ;;  %v385_v49 = vadd.f32 %v369_v44, %v321_v41  ;;  %v386_v50 = vadd.f32 %v370_v46, %v322_v45 }
  0x7b   : > { %v399_v51 = vadd.f32 0.5, %v383_v47  ;;  %v400_v52 = vadd.f32 0.5, %v384_v48  ;;  %v401_v53 = vadd.f32 0.5, %v385_v49  ;;  %v402_v54 = vadd.f32 0.5, %v386_v50 }
  0x7d   : > { %v415_v55 = vfloor.f32 %v399_v51  ;;  %v416_v56 = vfloor.f32 %v400_v52  ;;  %v417_v57 = vfloor.f32 %v401_v53  ;;  %v418_v60 = vfloor.f32 %v402_v54 }
  0x7f   : > { %v431_v61 = vsub.f32 %v383_v47, %v415_v55  ;;  %v432_v62 = vsub.f32 %v384_v48, %v416_v56  ;;  %v433_v63 = vsub.f32 %v385_v49, %v417_v57  ;;  %v434_v0 = vsub.f32 %v386_v50, %v418_v60 }
  0x81   : > { %v1820_v1 = vmul.f32 4.0, %v431_v61  ;;  %v1822_v2 = vmul.f32 4.0, %v432_v62  ;;  %v1824_v3 = vmul.f32 4.0, %v433_v63  ;;  %v1842_v53 = vmul.f32 4.0, %v434_v0 }
  0x83   : > { %v463_v56 = vadd.f32 0.5, %v1820_v1  ;;  %v464_v57 = vadd.f32 0.5, %v1822_v2  ;;  %v466_v0 = vadd.f32 0.5, %v1842_v53 }
  0x85   : > { %v295_v59 = vpop.permute.xlu1 %294 }
  0x86   : > { %v300_v58 = vpop.permute.xlu0 %299  ;;  %v323_v8 = vmul.f32 %v1796_v29, %v295_v59  ;;  %v324_v9 = vmul.f32 %v1798_v30, %v295_v59  ;;  %v325_v10 = vmul.f32 %v1800_v32, %v295_v59  ;;  %v326_v11 = vmul.f32 %v1808_v36, %v295_v59 }
  0x87   : > { %v327_v4 = vmul.f32 %v1796_v29, %v300_v58  ;;  %v328_v5 = vmul.f32 %v1798_v30, %v300_v58  ;;  %v329_v6 = vmul.f32 %v1800_v32, %v300_v58  ;;  %v330_v7 = vmul.f32 %v1808_v36, %v300_v58 }
  0x88   : > { %v465_v58 = vadd.f32 0.5, %v1824_v3 }
  0x8d   : > { %v344_v13 = vpop.permute.xlu1 %343 }
  0x8e   : > { %v349_v12 = vpop.permute.xlu0 %348  ;;  %v371_v18 = vmul.f32 %v1802_v33, %v344_v13  ;;  %v372_v19 = vmul.f32 %v1804_v34, %v344_v13  ;;  %v373_v20 = vmul.f32 %v1806_v35, %v344_v13  ;;  %v374_v21 = vmul.f32 %v1812_v40, %v344_v13 }
  0x8f   : > { %v375_v14 = vmul.f32 %v1802_v33, %v349_v12  ;;  %v376_v15 = vmul.f32 %v1804_v34, %v349_v12  ;;  %v377_v16 = vmul.f32 %v1806_v35, %v349_v12  ;;  %v378_v17 = vmul.f32 %v1812_v40, %v349_v12 }
  0x90   : > { %v387_v26 = vadd.f32 %v371_v18, %v323_v8  ;;  %v388_v27 = vadd.f32 %v372_v19, %v324_v9  ;;  %v389_v28 = vadd.f32 %v373_v20, %v325_v10  ;;  %v390_v31 = vadd.f32 %v374_v21, %v326_v11 }
  0x91   : > { %v391_v22 = vadd.f32 %v375_v14, %v327_v4  ;;  %v392_v23 = vadd.f32 %v376_v15, %v328_v5  ;;  %v393_v24 = vadd.f32 %v377_v16, %v329_v6  ;;  %v394_v25 = vadd.f32 %v378_v17, %v330_v7 }
  0x92   : > { %v403_v42 = vadd.f32 0.5, %v387_v26  ;;  %v404_v43 = vadd.f32 0.5, %v388_v27  ;;  %v405_v44 = vadd.f32 0.5, %v389_v28  ;;  %v406_v45 = vadd.f32 0.5, %v390_v31 }
  0x93   : > { %v407_v37 = vadd.f32 0.5, %v391_v22  ;;  %v408_v38 = vadd.f32 0.5, %v392_v23  ;;  %v409_v39 = vadd.f32 0.5, %v393_v24  ;;  %v410_v41 = vadd.f32 0.5, %v394_v25 }
  0x94   : > { %v419_v50 = vfloor.f32 %v403_v42  ;;  %v420_v51 = vfloor.f32 %v404_v43  ;;  %v421_v52 = vfloor.f32 %v405_v44  ;;  %v422_v59 = vfloor.f32 %v406_v45 }
  0x95   : > { %v423_v46 = vfloor.f32 %v407_v37  ;;  %v424_v47 = vfloor.f32 %v408_v38  ;;  %v425_v48 = vfloor.f32 %v409_v39  ;;  %v426_v49 = vfloor.f32 %v410_v41  ;;  %v334_v12 = vpop.permute.xlu1 %333 }
  0x96   : > { %v435_v4 = vsub.f32 %v387_v26, %v419_v50  ;;  %v436_v5 = vsub.f32 %v388_v27, %v420_v51  ;;  %v437_v6 = vsub.f32 %v389_v28, %v421_v52  ;;  %v1848_v9 = vfloor.f32 %v463_v56  ;;  %v285_v17 = vpop.permute.xlu0 %284 }
  0x97   : > { %v439_v54 = vsub.f32 %v391_v22, %v423_v46  ;;  %v440_v55 = vsub.f32 %v392_v23, %v424_v47  ;;  %v441_v60 = vsub.f32 %v393_v24, %v425_v48  ;;  %v442_v61 = vsub.f32 %v394_v25, %v426_v49 }
  0x98   : > { %v1850_v10 = vfloor.f32 %v464_v57  ;;  %v1852_v11 = vfloor.f32 %v465_v58  ;;  %v438_v16 = vsub.f32 %v390_v31, %v422_v59  ;;  %v1862_v19 = vmul.f32 4.0, %v435_v4 }
  0x99   : > { %v455_v62 = vmul.f32 4.0, %v439_v54  ;;  %v456_v63 = vmul.f32 4.0, %v440_v55  ;;  %v1854_v13 = vmul.f32 4.0, %v441_v60  ;;  %v1856_v14 = vmul.f32 4.0, %v442_v61 }
  0x9a   : > { %v1864_v20 = vmul.f32 4.0, %v436_v5  ;;  %v1866_v21 = vmul.f32 4.0, %v437_v6  ;;  %v363_v22 = vmul.f32 %v1802_v33, %v334_v12  ;;  %v364_v23 = vmul.f32 %v1804_v34, %v334_v12 }
  0x9b   : > { %v471_v7 = vadd.f32 0.5, %v455_v62  ;;  %v472_v8 = vadd.f32 0.5, %v456_v63  ;;  %v365_v24 = vmul.f32 %v1806_v35, %v334_v12  ;;  %v366_v25 = vmul.f32 %v1812_v40, %v334_v12 }
  0x9c   : > { %v315_v26 = vmul.f32 %v1796_v29, %v285_v17  ;;  %v316_v27 = vmul.f32 %v1798_v30, %v285_v17  ;;  %v317_v28 = vmul.f32 %v1800_v32, %v285_v17  ;;  %v318_v31 = vmul.f32 %v1808_v36, %v285_v17 }
  0x9d   : > { %v1858_v15 = vfloor.f32 %v471_v7  ;;  %v1860_v18 = vfloor.f32 %v472_v8  ;;  %v473_v37 = vadd.f32 0.5, %v1854_v13  ;;  %v474_v38 = vadd.f32 0.5, %v1856_v14 }
  0x9e   : > { %v1878_v39 = vmul.f32 4.0, %v438_v16  ;;  %v379_v34 = vadd.f32 %v363_v22, %v315_v26  ;;  %v380_v35 = vadd.f32 %v364_v23, %v316_v27  ;;  %v381_v41 = vadd.f32 %v365_v24, %v317_v28 }
  0x9f   : > { %v503_v33 = vsub.f32 %v455_v62, %v1858_v15  ;;  %v382_v40 = vadd.f32 %v366_v25, %v318_v31  ;;  %v467_v29 = vadd.f32 0.5, %v1862_v19  ;;  %v468_v30 = vadd.f32 0.5, %v1864_v20 }
  0xa0   : > { %v504_v32 = vsub.f32 %v456_v63, %v1860_v18  ;;  %v469_v36 = vadd.f32 0.5, %v1866_v21  ;;  %v395_v43 = vadd.f32 0.5, %v379_v34  ;;  %v396_v44 = vadd.f32 0.5, %v380_v35 }
  0xa1   : > { %v1883_v42 = vmul.f32 1.5707964, %v503_v33  ;;  %v397_v45 = vadd.f32 0.5, %v381_v41  ;;  %v1887_v46 = vfloor.f32 %v466_v0  ;;  %v470_v47 = vadd.f32 0.5, %v1878_v39 }
  0xa2   : > { %v1892_v49 = vmul.f32 1.5707964, %v504_v32  ;;  %v398_v50 = vadd.f32 0.5, %v382_v40  ;;  %v411_v51 = vfloor.f32 %v395_v43  ;;  %v412_v52 = vfloor.f32 %v396_v44 }
  0xa3   : > { %v535_v48 = vmul.f32 %v1883_v42, %v1883_v42  ;;  %v413_v54 = vfloor.f32 %v397_v45  ;;  %v1894_v55 = vfloor.f32 %v473_v37  ;;  %v1900_v59 = vfloor.f32 %v474_v38 }
  0xa4   : > { %v1898_v58 = vmul.f32 %v1892_v49, %v1892_v49  ;;  %v1902_v60 = vfloor.f32 %v467_v29  ;;  %v1904_v61 = vfloor.f32 %v468_v30  ;;  %v1906_v62 = vfloor.f32 %v469_v36 }
  0xa5   : > { %v551_v56 = vmul.f32 -0.00019515296, %v535_v48  ;;  %v663_v57 = vmul.f32 2.4433157e-05, %v535_v48  ;;  %v1908_v63 = vfloor.f32 %v470_v47  ;;  %v414_v7 = vfloor.f32 %v398_v50 }
  0xa6   : > { %v552_v6 = vmul.f32 -0.00019515296, %v1898_v58  ;;  %v427_v8 = vsub.f32 %v379_v34, %v411_v51  ;;  %v428_v0 = vsub.f32 %v380_v35, %v412_v52  ;;  %v429_v12 = vsub.f32 %v381_v41, %v413_v54 }
  0xa7   : > { %v567_v4 = vadd.f32 0.008332161, %v551_v56  ;;  %v679_v5 = vadd.f32 -0.0013887316, %v663_v57  ;;  %v664_v23 = vmul.f32 2.4433157e-05, %v1898_v58  ;;  %v505_v24 = vsub.f32 %v1854_v13, %v1894_v55 }
  0xa8   : > { %v568_v22 = vadd.f32 0.008332161, %v552_v6  ;;  %vm791_vm0 = vcmp.eq.f32.partialorder %v1858_v15, 1.0  ;;  %vm3028_vm1 = vcmp.eq.f32.partialorder %v1858_v15, -1.0  ;;  %vm3038_vm2 = vcmp.eq.f32.partialorder %v1858_v15, 2.0 }
  0xa9   : > { %v583_v16 = vmul.f32 %v567_v4, %v535_v48  ;;  %v695_v17 = vmul.f32 %v679_v5, %v535_v48  ;;  %vm3039_vm3 = vcmp.eq.f32.partialorder %v1858_v15, -2.0  ;;  %v680_v28 = vadd.f32 -0.0013887316, %v664_v23  ;;  %vm903_vm8 = vmor %vm791_vm0, %vm3038_vm2 }
  0xaa   : > { %v584_v27 = vmul.f32 %v568_v22, %v1898_v58  ;;  %v430_v31 = vsub.f32 %v382_v40, %v414_v7  ;;  %v1919_v37 = vmul.f32 4.0, %v427_v8  ;;  %v1921_v38 = vmul.f32 4.0, %v428_v0  ;;  %vm1971_vm9 = vmor %vm791_vm0, %vm3028_vm1 }
  0xab   : > { %v599_v25 = vadd.f32 -0.16666655, %v583_v16  ;;  %v711_v26 = vadd.f32 0.041666646, %v695_v17  ;;  %v1923_v33 = vmul.f32 4.0, %v429_v12  ;;  %v696_v29 = vmul.f32 %v680_v28, %v1898_v58  ;;  %vm919_vm11 = vmor %vm903_vm8, %vm3039_vm3 }
  0xac   : > { %v600_v41 = vadd.f32 -0.16666655, %v584_v27  ;;  %vm792_vm4 = vcmp.eq.f32.partialorder %v1860_v18, 1.0  ;;  %vm3025_vm5 = vcmp.eq.f32.partialorder %v1860_v18, -1.0  ;;  %vm3026_vm6 = vcmp.eq.f32.partialorder %v1860_v18, 2.0 }
  0xad   : > { %v615_v34 = vmul.f32 %v599_v25, %v535_v48  ;;  %v727_v35 = vmul.f32 %v711_v26, %v535_v48  ;;  %v1929_v13 = vmul.f32 1.5707964, %v505_v24  ;;  %v712_v36 = vadd.f32 0.041666646, %v696_v29  ;;  %vm1999_vm12 = vmor %vm792_vm4, %vm3025_vm5 }
  0xae   : > { %v616_v32 = vmul.f32 %v600_v41, %v1898_v58  ;;  %v1933_v43 = vmul.f32 4.0, %v430_v31  ;;  %v1936_v44 = vadd.f32 0.5, %v1919_v37  ;;  %vm3027_vm7 = vcmp.eq.f32.partialorder %v1860_v18, -2.0  ;;  %vm904_vm13 = vmor %vm792_vm4, %vm3026_vm6 }
  0xaf   : > { %v631_v40 = vmul.f32 %v615_v34, %v1883_v42  ;;  %v743_v30 = vadd.f32 -0.5, %v727_v35  ;;  %v537_v45 = vmul.f32 %v1929_v13, %v1929_v13  ;;  %v506_v47 = vsub.f32 %v1856_v14, %v1900_v59  ;;  %vm920_vm14 = vmor %vm904_vm13, %vm3027_vm7 }
  0xb0   : > { %v1944_v50 = vadd.f32 0.5, %v1921_v38  ;;  %v1947_v51 = vadd.f32 0.5, %v1923_v33  ;;  %v728_v54 = vmul.f32 %v712_v36, %v1898_v58  ;;  %v499_v5 = vsub.f32 %v1862_v19, %v1902_v60 }
  0xb1   : > { %v759_v52 = vmul.f32 %v743_v30, %v535_v48  ;;  %v553_v56 = vmul.f32 -0.00019515296, %v537_v45  ;;  %v665_v57 = vmul.f32 2.4433157e-05, %v537_v45  ;;  %v1950_v4 = vmul.f32 1.5707964, %v506_v47 }
  0xb2   : > { %v1955_v6 = vadd.f32 %v631_v40, %v1883_v42  ;;  %v632_v48 = vmul.f32 %v616_v32, %v1892_v49  ;;  %v744_v7 = vadd.f32 -0.5, %v728_v54  ;;  %v1965_v8 = vadd.f32 0.5, %v1933_v43 }
  0xb3   : > { %v1957_v14 = vadd.f32 1.0, %v759_v52  ;;  %v569_v42 = vadd.f32 0.008332161, %v553_v56  ;;  %v681_v0 = vadd.f32 -0.0013887316, %v665_v57  ;;  %v1977_v12 = vmul.f32 %v1950_v4, %v1950_v4 }
  0xb4   : > { %v760_v17 = vmul.f32 %v744_v7, %v1898_v58  ;;  %vm793_vm10 = vcmp.eq.f32.partialorder %v1894_v55, 1.0  ;;  %v1985_v22 = vmul.f32 1.5707964, %v499_v5  ;;  %v1991_v27 = vadd.f32 %v632_v48, %v1892_v49 }
  0xb5   : > { %v951_v16 = vsel %vm1971_vm9, %v1955_v6, %v1957_v14  ;;  %v585_v24 = vmul.f32 %v569_v42, %v537_v45  ;;  %v697_v25 = vmul.f32 %v681_v0, %v537_v45  ;;  %v554_v26 = vmul.f32 -0.00019515296, %v1977_v12 }
  0xb6   : > { %v999_v23 = vsub.f32 0.0, %v951_v16  ;;  %v1993_v28 = vadd.f32 1.0, %v760_v17  ;;  %v666_v31 = vmul.f32 2.4433157e-05, %v1977_v12  ;;  %v2006_v34 = vmul.f32 %v1985_v22, %v1985_v22 }
  0xb7   : > { %v601_v49 = vadd.f32 -0.16666655, %v585_v24  ;;  %v713_v41 = vadd.f32 0.041666646, %v697_v25  ;;  %v570_v29 = vadd.f32 0.008332161, %v554_v26 }
  0xb8   : > { %v1015_v35 = vsel %vm919_vm11, %v999_v23, %v951_v16  ;;  %v952_v40 = vsel %vm1999_vm12, %v1991_v27, %v1993_v28  ;;  %v682_v30 = vadd.f32 -0.0013887316, %v666_v31  ;;  %v547_v32 = vmul.f32 -0.00019515296, %v2006_v34 }
  0xb9   : > { %1064 = vmatpush.msra.mxu0 %v1015_v35  ;;  %v659_v36 = vmul.f32 2.4433157e-05, %v2006_v34  ;;  %v1000_v47 = vsub.f32 0.0, %v952_v40  ;;  %v617_v52 = vmul.f32 %v601_v49, %v537_v45  ;;  %v729_v54 = vmul.f32 %v713_v41, %v537_v45 }
  0xba   : > { %v586_v56 = vmul.f32 %v570_v29, %v1977_v12  ;;  %vm3029_vm15 = vcmp.eq.f32.partialorder %v1894_v55, -1.0  ;;  %v698_v57 = vmul.f32 %v682_v30, %v1977_v12  ;;  %v563_v5 = vadd.f32 0.008332161, %v547_v32 }
  0xbb   : > { %v675_v48 = vadd.f32 -0.0013887316, %v659_v36  ;;  %v1016_v7 = vsel %vm920_vm14, %v1000_v47, %v952_v40  ;;  %v633_v42 = vmul.f32 %v617_v52, %v1929_v13  ;;  %v745_v0 = vadd.f32 -0.5, %v729_v54  ;;  %vm2042_vm11 = vmor %vm793_vm10, %vm3029_vm15 }
  0xbc   : > { %v602_v16 = vadd.f32 -0.16666655, %v586_v56  ;;  %1093 = vmatpush.msra.mxu1 %v1016_v7  ;;  %vm3036_vm0 = vcmp.eq.f32.partialorder %v1894_v55, 2.0  ;;  %v714_v17 = vadd.f32 0.041666646, %v698_v57  ;;  %v579_v23 = vmul.f32 %v563_v5, %v2006_v34 }
  0xbd   : > { %v691_v24 = vmul.f32 %v675_v48, %v2006_v34  ;;  %v761_v25 = vmul.f32 %v745_v0, %v537_v45  ;;  %vm3037_vm4 = vcmp.eq.f32.partialorder %v1894_v55, -2.0  ;;  %vm794_vm8 = vcmp.eq.f32.partialorder %v1900_v59, 1.0  ;;  %vm905_vm14 = vmor %vm793_vm10, %vm3036_vm0 }
  0xbe   : > { %v618_v26 = vmul.f32 %v602_v16, %v1977_v12  ;;  %v730_v31 = vmul.f32 %v714_v17, %v1977_v12  ;;  %v595_v35 = vadd.f32 -0.16666655, %v579_v23  ;;  %v500_v41 = vsub.f32 %v1864_v20, %v1904_v61  ;;  %vm921_vm10 = vmor %vm905_vm14, %vm3037_vm4 }
  0xbf   : > { %v707_v49 = vadd.f32 0.041666646, %v691_v24  ;;  %v2034_v29 = vadd.f32 %v633_v42, %v1929_v13  ;;  %v2036_v40 = vadd.f32 1.0, %v761_v25  ;;  %vm3030_vm13 = vcmp.eq.f32.partialorder %v1900_v59, -1.0 }
  0xc0   : > { %v634_v30 = vmul.f32 %v618_v26, %v1950_v4  ;;  %v746_v20 = vadd.f32 -0.5, %v730_v31  ;;  %v611_v13 = vmul.f32 %v595_v35, %v2006_v34  ;;  %v2054_v36 = vmul.f32 1.5707964, %v500_v41  ;;  %vm2084_vm14 = vmor %vm794_vm8, %vm3030_vm13 }
  0xc1   : > { %v723_v32 = vmul.f32 %v707_v49, %v2006_v34  ;;  %v953_v47 = vsel %vm2042_vm11, %v2034_v29, %v2036_v40  ;;  %vm3031_vm5 = vcmp.eq.f32.partialorder %v1900_v59, 2.0  ;;  %vm3034_vm6 = vcmp.eq.f32.partialorder %v1900_v59, -2.0 }
  0xc2   : > { %vm787_vm7 = vcmp.eq.f32.partialorder %v1902_v60, 1.0  ;;  %v1001_v52 = vsub.f32 0.0, %v953_v47  ;;  %v762_v54 = vmul.f32 %v746_v20, %v1977_v12  ;;  %v627_v56 = vmul.f32 %v611_v13, %v1985_v22 }
  0xc3   : > { %v739_v57 = vadd.f32 -0.5, %v723_v32  ;;  %vm3032_vm1 = vcmp.eq.f32.partialorder %v1902_v60, -1.0  ;;  %vm3033_vm15 = vcmp.eq.f32.partialorder %v1902_v60, 2.0  ;;  %v2071_v5 = vmul.f32 %v2054_v36, %v2054_v36 }
  0xc4   : > { %v501_v48 = vsub.f32 %v1866_v21, %v1906_v62  ;;  %v1017_v7 = vsel %vm921_vm10, %v1001_v52, %v953_v47  ;;  %v2076_v12 = vadd.f32 %v634_v30, %v1950_v4  ;;  %v2078_v42 = vadd.f32 1.0, %v762_v54  ;;  %vm2093_vm10 = vmor %vm794_vm8, %vm3031_vm5 }
  0xc5   : > { %v3080_v0 = vmov 0  ;;  %v755_v16 = vmul.f32 %v739_v57, %v2006_v34  ;;  %1122 = vmatpush.msra.mxu2 %v1017_v7  ;;  %v548_v4 = vmul.f32 -0.00019515296, %v2071_v5  ;;  %v660_v17 = vmul.f32 2.4433157e-05, %v2071_v5  ;;  %vm2116_vm8 = vmor %vm787_vm7, %vm3032_vm1 }
  0xc6   : > { %v3081_v0 = vsel %vm2084_vm14, 4294967295, %v3080_v0  ;;  %v2099_v23 = vmul.f32 1.5707964, %v501_v48  ;;  %v502_v24 = vsub.f32 %v1878_v39, %v1908_v63  ;;  %v954_v34 = vsel %vm2084_vm14, %v2076_v12, %v2078_v42  ;;  %vm2125_vm5 = vmor %vm787_vm7, %vm3033_vm15 }
  0xc7   : > { %3082 = vst [vmem:[#allocation8_spill] sm:$0xff] %v3081_v0  ;;  %v2108_v25 = vadd.f32 %v627_v56, %v1985_v22  ;;  %v2110_v26 = vadd.f32 1.0, %v755_v16  ;;  %vm3035_vm13 = vcmp.eq.f32.partialorder %v1902_v60, -2.0  ;;  %v1002_v39 = vsub.f32 0.0, %v954_v34  ;;  %vm922_vm1 = vmor %vm2093_vm10, %vm3034_vm6 }
  0xc8   : > { %v564_v35 = vadd.f32 0.008332161, %v548_v4  ;;  %v676_v49 = vadd.f32 -0.0013887316, %v660_v17  ;;  %v2131_v41 = vmul.f32 %v2099_v23, %v2099_v23  ;;  %v2134_v30 = vfloor.f32 %v1936_v44  ;;  %vm915_vm10 = vmor %vm2125_vm5, %vm3035_vm13 }
  0xc9   : > { %v947_v20 = vsel %vm2116_vm8, %v2108_v25, %v2110_v26  ;;  %vm788_vm7 = vcmp.eq.f32.partialorder %v1904_v61, 1.0  ;;  %v2145_v13 = vmul.f32 1.5707964, %v502_v24  ;;  %v1018_v32 = vsel %vm922_vm1, %v1002_v39, %v954_v34 }
  0xca   : > { %v995_v47 = vsub.f32 0.0, %v947_v20  ;;  %v580_v52 = vmul.f32 %v564_v35, %v2071_v5  ;;  %v692_v44 = vmul.f32 %v676_v49, %v2071_v5  ;;  %vm3040_vm15 = vcmp.eq.f32.partialorder %v1904_v61, -1.0  ;;  %1151 = vmatpush.msra.mxu3 %v1018_v32 }
  0xcb   : > { %vm3041_vm6 = vcmp.eq.f32.partialorder %v1904_v61, 2.0  ;;  %v549_v54 = vmul.f32 -0.00019515296, %v2131_v41  ;;  %v661_v56 = vmul.f32 2.4433157e-05, %v2131_v41  ;;  %v2159_v57 = vmul.f32 %v2145_v13, %v2145_v13  ;;  %vm2202_vm3 = vmor %vm788_vm7, %vm3040_vm15 }
  0xcc   : > { %v1011_v48 = vsel %vm915_vm10, %v995_v47, %v947_v20  ;;  %v596_v7 = vadd.f32 -0.16666655, %v580_v52  ;;  %v708_v16 = vadd.f32 0.041666646, %v692_v44  ;;  %vm3048_vm1 = vcmp.eq.f32.partialorder %v1904_v61, -2.0  ;;  %vm900_vm2 = vmor %vm788_vm7, %vm3041_vm6 }
  0xcd   : > { %1065 = vmatpush.msra.mxu0 %v1011_v48  ;;  %v565_v21 = vadd.f32 0.008332161, %v549_v54  ;;  %v677_v4 = vadd.f32 -0.0013887316, %v661_v56  ;;  %v550_v17 = vmul.f32 -0.00019515296, %v2159_v57  ;;  %v495_v24 = vsub.f32 %v1820_v1, %v1848_v9  ;;  %vm916_vm7 = vmor %vm900_vm2, %vm3048_vm1 }
  0xce   : > { %v612_v34 = vmul.f32 %v596_v7, %v2071_v5  ;;  %v724_v39 = vmul.f32 %v708_v16, %v2071_v5  ;;  %vm789_vm5 = vcmp.eq.f32.partialorder %v1906_v62, 1.0  ;;  %v662_v22 = vmul.f32 2.4433157e-05, %v2159_v57 }
  0xcf   : > { %v581_v35 = vmul.f32 %v565_v21, %v2131_v41  ;;  %v693_v49 = vmul.f32 %v677_v4, %v2131_v41  ;;  %vm3043_vm10 = vcmp.eq.f32.partialorder %v1906_v62, -1.0  ;;  %v566_v20 = vadd.f32 0.008332161, %v550_v17 }
  0xd0   : > { %v2172_v32 = vmul.f32 1.5707964, %v495_v24  ;;  %v628_v47 = vmul.f32 %v612_v34, %v2054_v36  ;;  %v740_v1 = vadd.f32 -0.5, %v724_v39  ;;  %vm3042_vm13 = vcmp.eq.f32.partialorder %v1906_v62, 2.0 }
  0xd1   : > { %v678_v52 = vadd.f32 -0.0013887316, %v662_v22  ;;  %v597_v44 = vadd.f32 -0.16666655, %v581_v35  ;;  %v709_v54 = vadd.f32 0.041666646, %v693_v49  ;;  %v582_v56 = vmul.f32 %v566_v20, %v2159_v57  ;;  %vm2224_vm6 = vmor %vm789_vm5, %vm3042_vm13 }
  0xd2   : > { %v2179_v48 = vmul.f32 %v2172_v32, %v2172_v32  ;;  %v756_v7 = vmul.f32 %v740_v1, %v2071_v5  ;;  %vm3044_vm0 = vcmp.eq.f32.partialorder %v1906_v62, -2.0  ;;  %vm790_vm4 = vcmp.eq.f32.partialorder %v1908_v63, 1.0  ;;  %vm2242_vm13 = vmor %vm789_vm5, %vm3043_vm10 }
  0xd3   : > { %v694_v16 = vmul.f32 %v678_v52, %v2159_v57  ;;  %v613_v21 = vmul.f32 %v597_v44, %v2131_v41  ;;  %v725_v4 = vmul.f32 %v709_v54, %v2131_v41  ;;  %v598_v17 = vadd.f32 -0.16666655, %v582_v56 }
  0xd4   : > { %v543_v24 = vmul.f32 -0.00019515296, %v2179_v48  ;;  %v2189_v34 = vadd.f32 %v628_v47, %v2054_v36  ;;  %v2191_v39 = vadd.f32 1.0, %v756_v7  ;;  %v655_v22 = vmul.f32 2.4433157e-05, %v2179_v48 }
  0xd5   : > { %v710_v5 = vadd.f32 0.041666646, %v694_v16  ;;  %v629_v36 = vmul.f32 %v613_v21, %v2099_v23  ;;  %v741_v49 = vadd.f32 -0.5, %v725_v4  ;;  %v614_v20 = vmul.f32 %v598_v17, %v2159_v57 }
  0xd6   : > { %v559_v47 = vadd.f32 0.008332161, %v543_v24  ;;  %v948_v1 = vsel %vm2202_vm3, %v2189_v34, %v2191_v39  ;;  %v671_v44 = vadd.f32 -0.0013887316, %v655_v22  ;;  %v496_v54 = vsub.f32 %v1822_v2, %v1850_v10 }
  0xd7   : > { %v726_v52 = vmul.f32 %v710_v5, %v2159_v57  ;;  %v996_v56 = vsub.f32 0.0, %v948_v1  ;;  %v757_v7 = vmul.f32 %v741_v49, %v2131_v41  ;;  %v630_v16 = vmul.f32 %v614_v20, %v2145_v13 }
  0xd8   : > { %vm3046_vm15 = vcmp.eq.f32.partialorder %v1908_v63, -1.0  ;;  %v575_v2 = vmul.f32 %v559_v47, %v2179_v48  ;;  %v687_v17 = vmul.f32 %v671_v44, %v2179_v48  ;;  %v2230_v24 = vmul.f32 1.5707964, %v496_v54 }
  0xd9   : > { %v742_v4 = vadd.f32 -0.5, %v726_v52  ;;  %v1012_v41 = vsel %vm916_vm7, %v996_v56, %v948_v1  ;;  %v2233_v5 = vadd.f32 %v629_v36, %v2099_v23  ;;  %v2235_v22 = vadd.f32 1.0, %v757_v7  ;;  %vm917_vm7 = vmor %vm2224_vm6, %vm3044_vm0 }
  0xda   : > { %vm3047_vm2 = vcmp.eq.f32.partialorder %v1908_v63, 2.0  ;;  %1094 = vmatpush.msra.mxu1 %v1012_v41  ;;  %v3093_v49 = vmov 0  ;;  %v591_v47 = vadd.f32 -0.16666655, %v575_v2  ;;  %v703_v1 = vadd.f32 0.041666646, %v687_v17  ;;  %vm2272_vm10 = vmor %vm790_vm4, %vm3046_vm15 }
  0xdb   : > { %v3094_v49 = vsel %vm2242_vm13, 4294967295, %v3093_v49  ;;  %v758_v20 = vmul.f32 %v742_v4, %v2159_v57  ;;  %v2249_v23 = vmul.f32 %v2230_v24, %v2230_v24  ;;  %v2252_v36 = vfloor.f32 %v1944_v50  ;;  %vm2282_vm6 = vmor %vm790_vm4, %vm3047_vm2 }
  0xdc   : > { %v949_v52 = vsel %vm2242_vm13, %v2233_v5, %v2235_v22  ;;  %v2263_v57 = vadd.f32 %v630_v16, %v2145_v13  ;;  %vm3049_vm5 = vcmp.eq.f32.partialorder %v1908_v63, -2.0  ;;  %v3097_v50 = vmov 0 }
  0xdd   : > { %v997_v44 = vsub.f32 0.0, %v949_v52  ;;  %v2266_v54 = vadd.f32 1.0, %v758_v20  ;;  %v3098_v50 = vsel %vm2272_vm10, 4294967295, %v3097_v50  ;;  %v607_v56 = vmul.f32 %v591_v47, %v2179_v48 }
  0xde   : > { %3095 = vst [vmem:[#allocation9_spill] sm:$0xff] %v2263_v57  ;;  %v719_v7 = vmul.f32 %v703_v1, %v2179_v48  ;;  %v544_v16 = vmul.f32 -0.00019515296, %v2249_v23  ;;  %v656_v21 = vmul.f32 2.4433157e-05, %v2249_v23  ;;  %v497_v4 = vsub.f32 %v1824_v3, %v1852_v11 }
  0xdf   : > { %3096 = vst [vmem:[#allocation10_spill] sm:$0xff] %v2266_v54  ;;  %v1013_v2 = vsel %vm917_vm7, %v997_v44, %v949_v52  ;;  %v950_v17 = vsel %vm2272_vm10, %v2263_v57, %v2266_v54  ;;  %v623_v41 = vmul.f32 %v607_v56, %v2172_v32  ;;  %vm3102_vm15 = vcmp.eq.f32.partialorder %v1858_v15, -2.0  ;;  %vm918_vm7 = vmor %vm2282_vm6, %vm3049_vm5 }
  0xe0   : > { %3099 = vst [vmem:[#allocation11_spill] sm:$0xff] %v3098_v50  ;;  %v735_v20 = vadd.f32 -0.5, %v719_v7  ;;  %1123 = vmatpush.msra.mxu2 %v1013_v2  ;;  %v998_v47 = vsub.f32 0.0, %v950_v17  ;;  %v560_v1 = vadd.f32 0.008332161, %v544_v16  ;;  %vm3103_vm2 = vcmp.eq.f32.partialorder %v1858_v15, 2.0 }
  0xe1   : > { %v672_v0 = vadd.f32 -0.0013887316, %v656_v21  ;;  %vm2301_vm1 = vmor %vm3103_vm2, %vm3102_vm15  ;;  %vm3050_vm0 = vcmp.eq.f32.partialorder %v1848_v9, 2.0  ;;  %v2312_v44 = vmul.f32 1.5707964, %v497_v4  ;;  %v2318_v21 = vadd.f32 %v623_v41, %v2172_v32 }
  0xe2   : > { %v751_v52 = vmul.f32 %v735_v20, %v2179_v48  ;;  %v1014_v56 = vsel %vm918_vm7, %v998_v47, %v950_v17  ;;  %v576_v7 = vmul.f32 %v560_v1, %v2249_v23  ;;  %vm3106_vm2 = vcmp.eq.f32.partialorder %v1848_v9, -1.0 }
  0xe3   : > { %v688_v16 = vmul.f32 %v672_v0, %v2249_v23  ;;  %1152 = vmatpush.msra.mxu3 %v1014_v56  ;;  %vm3107_vm6 = vcmp.eq.f32.partialorder %v1848_v9, 1.0  ;;  %v3108_v48 = vmov 0  ;;  %v2332_v4 = vmul.f32 %v2312_v44, %v2312_v44 }
  0xe4   : > { %v2320_v13 = vadd.f32 1.0, %v751_v52  ;;  %vm2326_vm5 = vmor %vm3107_vm6, %vm3106_vm2  ;;  %v498_v0 = vsub.f32 %v1842_v53, %v1887_v46  ;;  %v592_v32 = vadd.f32 -0.16666655, %v576_v7  ;;  %vm3057_vm2 = vcmp.eq.f32.partialorder %v1850_v10, 2.0 }
  0xe5   : > { %v3109_v48 = vsel %vm2326_vm5, 4294967295, %v3108_v48  ;;  %vm3111_vm7 = vmmov %vm3107_vm6  ;;  %v704_v2 = vadd.f32 0.041666646, %v688_v16  ;;  %v545_v41 = vmul.f32 -0.00019515296, %v2332_v4  ;;  %vm3114_vm4 = vcmp.eq.f32.partialorder %v1894_v55, 2.0 }
  0xe6   : > { %3110 = vst [vmem:[#allocation12_spill] sm:$0xff] %v3109_v48  ;;  %vm895_vm15 = vmor %vm3111_vm7, %vm3050_vm0  ;;  %v943_v17 = vsel %vm2326_vm5, %v2318_v21, %v2320_v13  ;;  %v657_v53 = vmul.f32 2.4433157e-05, %v2332_v4  ;;  %v2348_v20 = vmul.f32 1.5707964, %v498_v0  ;;  %v608_v1 = vmul.f32 %v592_v32, %v2249_v23 }
  0xe7   : > { %v991_v47 = vsub.f32 0.0, %v943_v17  ;;  %v720_v52 = vmul.f32 %v704_v2, %v2249_v23  ;;  %vm3112_vm7 = vcmp.eq.f32.partialorder %v1848_v9, -2.0  ;;  %v561_v56 = vadd.f32 0.008332161, %v545_v41 }
  0xe8   : > { %vm911_vm0 = vmor %vm895_vm15, %vm3112_vm7  ;;  %v673_v7 = vadd.f32 -0.0013887316, %v657_v53  ;;  %v2357_v16 = vmul.f32 %v2348_v20, %v2348_v20  ;;  %v491_v0 = vsub.f32 %v1919_v37, %v2134_v30  ;;  %v624_v54 = vmul.f32 %v608_v1, %v2230_v24 }
  0xe9   : > { %v1007_v50 = vsel %vm911_vm0, %v991_v47, %v943_v17  ;;  %v736_v32 = vadd.f32 -0.5, %v720_v52  ;;  %v577_v2 = vmul.f32 %v561_v56, %v2332_v4  ;;  %vm3113_vm7 = vcmp.eq.f32.partialorder %v1894_v55, -2.0 }
  0xea   : > { %1066 = vmatpush.msra.mxu0 %v1007_v50  ;;  %v689_v57 = vmul.f32 %v673_v7, %v2332_v4  ;;  %v546_v41 = vmul.f32 -0.00019515296, %v2357_v16  ;;  %v658_v53 = vmul.f32 2.4433157e-05, %v2357_v16  ;;  %v2370_v37 = vmul.f32 1.5707964, %v491_v0  ;;  %vm873_vm6 = vmor %vm3114_vm4, %vm3113_vm7 }
  0xeb   : > { %v752_v48 = vmul.f32 %v736_v32, %v2249_v23  ;;  %v2377_v50 = vfloor.f32 %v1947_v51  ;;  %vm3115_vm10 = vcmp.eq.f32.partialorder %v1850_v10, 1.0  ;;  %v593_v17 = vadd.f32 -0.16666655, %v577_v2 }
  0xec   : > { %vm2383_vm5 = vmor %vm3115_vm10, %vm3057_vm2  ;;  %v705_v47 = vadd.f32 0.041666646, %v689_v57  ;;  %v562_v1 = vadd.f32 0.008332161, %v546_v41  ;;  %v2388_v52 = vadd.f32 %v624_v54, %v2230_v24  ;;  %v674_v51 = vadd.f32 -0.0013887316, %v658_v53 }
  0xed   : > { %v2390_v56 = vadd.f32 1.0, %v752_v48  ;;  %v2395_v7 = vmul.f32 %v2370_v37, %v2370_v37  ;;  %vm3120_vm10 = vcmp.eq.f32.partialorder %v1894_v55, -1.0  ;;  %v3121_v0 = vmov 0 }
  0xee   : > { %3118 = vst [vmem:[#allocation13_spill] sm:$0xff] %v2388_v52  ;;  %vm2399_vm7 = vmor %vm873_vm6, %vm3120_vm10  ;;  %vm3124_vm2 = vcmp.eq.f32.partialorder %v1850_v10, -1.0  ;;  %vm3125_vm0 = vcmp.eq.f32.partialorder %v1850_v10, 1.0  ;;  %v3126_v24 = vmov 0  ;;  %v609_v57 = vmul.f32 %v593_v17, %v2332_v4 }
  0xef   : > { %3119 = vst [vmem:[#allocation14_spill] sm:$0xff] %v2390_v56  ;;  %v3122_v0 = vsel %vm2399_vm7, 4294967295, %v3121_v0  ;;  %vm2407_vm15 = vmor %vm3125_vm0, %vm3124_vm2  ;;  %v721_v54 = vmul.f32 %v705_v47, %v2332_v4  ;;  %v578_v48 = vmul.f32 %v562_v1, %v2357_v16  ;;  %v492_v55 = vsub.f32 %v1921_v38, %v2252_v36 }
  0xf0   : > { %3123 = vst [vmem:[#allocation15_spill] sm:$0xff] %v3122_v0  ;;  %v3127_v24 = vsel %vm2407_vm15, 4294967295, %v3126_v24  ;;  %vm3129_vm10 = vcmp.eq.f32.partialorder %v1850_v10, -2.0  ;;  %v944_v2 = vsel %vm2407_vm15, %v2388_v52, %v2390_v56  ;;  %v690_v41 = vmul.f32 %v674_v51, %v2357_v16 }
  0xf1   : > { %3128 = vst [vmem:[#allocation16_spill] sm:$0xff] %v3127_v24  ;;  %vm2422_vm2 = vmor %vm2383_vm5, %vm3129_vm10  ;;  %v539_v53 = vmul.f32 -0.00019515296, %v2395_v7  ;;  %v651_v38 = vmul.f32 2.4433157e-05, %v2395_v7  ;;  %v992_v17 = vsub.f32 0.0, %v944_v2  ;;  %v625_v23 = vmul.f32 %v609_v57, %v2312_v44 }
  0xf2   : > { %v737_v47 = vadd.f32 -0.5, %v721_v54  ;;  %v594_v1 = vadd.f32 -0.16666655, %v578_v48  ;;  %vm3132_vm5 = vcmp.eq.f32.partialorder %v1900_v59, -2.0  ;;  %vm3133_vm10 = vcmp.eq.f32.partialorder %v1900_v59, 2.0 }
  0xf3   : > { %vm874_vm4 = vmor %vm3133_vm10, %vm3132_vm5  ;;  %v2440_v0 = vfloor.f32 %v1965_v8  ;;  %v706_v51 = vadd.f32 0.041666646, %v690_v41  ;;  %v555_v24 = vadd.f32 0.008332161, %v539_v53  ;;  %v667_v56 = vadd.f32 -0.0013887316, %v651_v38 }
  0xf4   : > { %vm3134_vm6 = vcmp.eq.f32.partialorder %v1900_v59, -1.0  ;;  %v3135_v52 = vmov 0  ;;  %v1008_v57 = vsel %vm2422_vm2, %v992_v17, %v944_v2  ;;  %v753_v54 = vmul.f32 %v737_v47, %v2332_v4 }
  0xf5   : > { %vm2445_vm7 = vmor %vm874_vm4, %vm3134_vm6  ;;  %v610_v48 = vmul.f32 %v594_v1, %v2357_v16  ;;  %vm3138_vm10 = vcmp.eq.f32.partialorder %v1902_v60, -2.0  ;;  %vm3139_vm0 = vcmp.eq.f32.partialorder %v1902_v60, 2.0  ;;  %1095 = vmatpush.msra.mxu1 %v1008_v57  ;;  %v722_v59 = vmul.f32 %v706_v51, %v2357_v16 }
  0xf6   : > { %v3136_v52 = vsel %vm2445_vm7, 4294967295, %v3135_v52  ;;  %vm867_vm15 = vmor %vm3139_vm0, %vm3138_vm10  ;;  %v571_v8 = vmul.f32 %v555_v24, %v2395_v7  ;;  %v683_v41 = vmul.f32 %v667_v56, %v2395_v7  ;;  %v2461_v32 = vmul.f32 1.5707964, %v492_v55 }
  0xf7   : > { %3137 = vst [vmem:[#allocation17_spill] sm:$0xff] %v3136_v52  ;;  %vm3140_vm4 = vcmp.eq.f32.partialorder %v1902_v60, -1.0  ;;  %v3141_v4 = vmov 0  ;;  %v2470_v2 = vadd.f32 %v625_v23, %v2312_v44  ;;  %v2472_v53 = vadd.f32 1.0, %v753_v54 }
  0xf8   : > { %vm2465_vm6 = vmor %vm867_vm15, %vm3140_vm4  ;;  %vm3143_vm2 = vcmp.eq.f32.partialorder %v1852_v11, -1.0  ;;  %vm3144_vm0 = vcmp.eq.f32.partialorder %v1852_v11, 1.0  ;;  %v3145_v24 = vmov 0  ;;  %v626_v56 = vmul.f32 %v610_v48, %v2348_v20 }
  0xf9   : > { %v3142_v4 = vsel %vm2465_vm6, 4294967295, %v3141_v4  ;;  %vm2478_vm10 = vmor %vm3144_vm0, %vm3143_vm2  ;;  %v493_v60 = vsub.f32 %v1923_v33, %v2377_v50  ;;  %vm3147_vm15 = vcmp.eq.f32.partialorder %v1852_v11, 2.0  ;;  %v738_v44 = vadd.f32 -0.5, %v722_v59 }
  0xfa   : > { %v3146_v24 = vsel %vm2478_vm10, 4294967295, %v3145_v24  ;;  %vm3148_vm4 = vmmov %vm3144_vm0  ;;  %v587_v55 = vadd.f32 -0.16666655, %v571_v8  ;;  %v699_v38 = vadd.f32 0.041666646, %v683_v41  ;;  %v2491_v17 = vmul.f32 %v2461_v32, %v2461_v32 }
  0xfb   : > { %vm897_vm5 = vmor %vm3148_vm4, %vm3147_vm15  ;;  %v945_v23 = vsel %vm2478_vm10, %v2470_v2, %v2472_v53  ;;  %v754_v47 = vmul.f32 %v738_v44, %v2357_v16  ;;  %vm3149_vm15 = vcmp.eq.f32.partialorder %v1852_v11, -2.0  ;;  %v2506_v57 = vadd.f32 %v626_v56, %v2348_v20 }
  0xfc   : > { %v993_v33 = vsub.f32 0.0, %v945_v23  ;;  %v603_v1 = vmul.f32 %v587_v55, %v2395_v7  ;;  %v715_v51 = vmul.f32 %v699_v38, %v2395_v7  ;;  %vm913_vm4 = vmor %vm897_vm5, %vm3149_vm15  ;;  %v540_v54 = vmul.f32 -0.00019515296, %v2491_v17 }
  0xfd   : > { %v652_v48 = vmul.f32 2.4433157e-05, %v2491_v17  ;;  %v2511_v59 = vmul.f32 1.5707964, %v493_v60  ;;  %v2513_v16 = vadd.f32 1.0, %v754_v47  ;;  %vm3151_vm7 = vcmp.eq.f32.partialorder %v1887_v46, 2.0 }
  0xfe   : > { %v1009_v8 = vsel %vm913_vm4, %v993_v33, %v945_v23  ;;  %vm3152_vm2 = vcmp.eq.f32.partialorder %v1887_v46, 1.0  ;;  %v619_v41 = vmul.f32 %v603_v1, %v2370_v37  ;;  %v731_v20 = vadd.f32 -0.5, %v715_v51 }
  0xff   : > { %3150 = vst [vmem:[#allocation18_spill] sm:$0xff] %v2513_v16  ;;  %vm898_vm10 = vmor %vm3152_vm2, %vm3151_vm7  ;;  %1124 = vmatpush.msra.mxu2 %v1009_v8  ;;  %vm3153_vm5 = vcmp.eq.f32.partialorder %v1887_v46, -1.0  ;;  %v3155_v56 = vmov 0  ;;  %v556_v60 = vadd.f32 0.008332161, %v540_v54  ;;  %v2531_v55 = vmul.f32 %v2511_v59, %v2511_v59 }
 0x100   : > { %vm3154_vm15 = vmmov %vm3152_vm2  ;;  %v668_v44 = vadd.f32 -0.0013887316, %v652_v48  ;;  %v747_v23 = vmul.f32 %v731_v20, %v2395_v7  ;;  %v494_v33 = vsub.f32 %v1933_v43, %v2440_v0  ;;  %vm3158_vm2 = vcmp.eq.f32.partialorder %v1887_v46, -2.0 }
 0x101   : > { %vm2524_vm14 = vmor %vm3154_vm15, %vm3153_vm5  ;;  %v572_v1 = vmul.f32 %v556_v60, %v2491_v17  ;;  %v541_v54 = vmul.f32 -0.00019515296, %v2531_v55  ;;  %v2547_v48 = vadd.f32 %v619_v41, %v2370_v37  ;;  %vm3159_vm15 = vcmp.eq.f32.partialorder %v2134_v30, -1.0 }
 0x102   : > { %v3156_v56 = vsel %vm2524_vm14, 4294967295, %v3155_v56  ;;  %v946_v38 = vsel %vm2524_vm14, %v2506_v57, %v2513_v16  ;;  %vm914_vm5 = vmor %vm898_vm10, %vm3158_vm2  ;;  %v684_v51 = vmul.f32 %v668_v44, %v2491_v17  ;;  %v2549_v8 = vadd.f32 1.0, %v747_v23 }
 0x103   : > { %3157 = vst [vmem:[#allocation19_spill] sm:$0xff] %v3156_v56  ;;  %v994_v47 = vsub.f32 0.0, %v946_v38  ;;  %vm3160_vm4 = vcmp.eq.f32.partialorder %v2134_v30, 1.0  ;;  %v3161_v43 = vmov 0  ;;  %v653_v7 = vmul.f32 2.4433157e-05, %v2531_v55 }
 0x104   : > { %vm2555_vm0 = vmor %vm3160_vm4, %vm3159_vm15  ;;  %vm3163_vm2 = vcmp.eq.f32.partialorder %v2134_v30, 2.0  ;;  %v588_v41 = vadd.f32 -0.16666655, %v572_v1  ;;  %v700_v60 = vadd.f32 0.041666646, %v684_v51  ;;  %vm3170_vm15 = vcmp.eq.f32.partialorder %v1848_v9, -2.0 }
 0x105   : > { %v3162_v43 = vsel %vm2555_vm0, 4294967295, %v3161_v43  ;;  %v1010_v20 = vsel %vm914_vm5, %v994_v47, %v946_v38  ;;  %vm3164_vm7 = vmmov %vm3160_vm4  ;;  %v557_v44 = vadd.f32 0.008332161, %v541_v54  ;;  %v939_v23 = vsel %vm2555_vm0, %v2547_v48, %v2549_v8 }
 0x106   : > { %vm2565_vm14 = vmor %vm3164_vm7, %vm3163_vm2  ;;  %1153 = vmatpush.msra.mxu3 %v1010_v20  ;;  %v669_v52 = vadd.f32 -0.0013887316, %v653_v7  ;;  %v2574_v38 = vmul.f32 1.5707964, %v494_v33  ;;  %vm3167_vm5 = vcmp.eq.f32.partialorder %v1858_v15, -1.0  ;;  %vm3171_vm2 = vcmp.eq.f32.partialorder %v1848_v9, 2.0 }
 0x107   : > { %vm2580_vm7 = vmor %vm2301_vm1, %vm3167_vm5  ;;  %v987_v51 = vsub.f32 0.0, %v939_v23  ;;  %v604_v33 = vmul.f32 %v588_v41, %v2491_v17  ;;  %v716_v54 = vmul.f32 %v700_v60, %v2491_v17  ;;  %v573_v15 = vmul.f32 %v557_v44, %v2531_v55 }
 0x108   : > { %vm2588_vm10 = vmor %vm3171_vm2, %vm3170_vm15  ;;  %vm3174_vm1 = vcmp.eq.f32.partialorder %v1860_v18, -2.0  ;;  %vm3175_vm5 = vcmp.eq.f32.partialorder %v1860_v18, 2.0  ;;  %vm3178_vm15 = vcmp.eq.f32.partialorder %v2134_v30, -2.0  ;;  %v685_v7 = vmul.f32 %v669_v52, %v2531_v55 }
 0x109   : > { %vm2599_vm4 = vmor %vm3175_vm5, %vm3174_vm1  ;;  %v2612_v20 = vmul.f32 %v2574_v38, %v2574_v38  ;;  %v620_v60 = vmul.f32 %v604_v33, %v2461_v32  ;;  %v732_v44 = vadd.f32 -0.5, %v716_v54  ;;  %v589_v56 = vadd.f32 -0.16666655, %v573_v15 }
 0x10a   : > { %vm907_vm2 = vmor %vm2565_vm14, %vm3178_vm15  ;;  %vm3179_vm1 = vcmp.eq.f32.partialorder %v1904_v61, -2.0  ;;  %vm3180_vm5 = vcmp.eq.f32.partialorder %v1904_v61, 2.0  ;;  %vm3183_vm15 = vcmp.eq.f32.partialorder %v2252_v36, 2.0  ;;  %vm3184_vm0 = vcmp.eq.f32.partialorder %v2252_v36, 1.0 }
 0x10b   : > { %v1003_v41 = vsel %vm907_vm2, %v987_v51, %v939_v23  ;;  %vm2619_vm14 = vmor %vm3180_vm5, %vm3179_vm1  ;;  %v701_v23 = vadd.f32 0.041666646, %v685_v7  ;;  %v542_v51 = vmul.f32 -0.00019515296, %v2612_v20  ;;  %v654_v33 = vmul.f32 2.4433157e-05, %v2612_v20 }
 0x10c   : > { %1067 = vmatpush.msra.mxu0 %v1003_v41  ;;  %vm2627_vm6 = vmor %vm3184_vm0, %vm3183_vm15  ;;  %v935_v54 = vsel %vm1971_vm9, %v1957_v14, %v1955_v6  ;;  %v748_v15 = vmul.f32 %v732_v44, %v2491_v17  ;;  %v605_v41 = vmul.f32 %v589_v56, %v2531_v55  ;;  %vm3187_vm1 = vcmp.eq.f32.partialorder %v1860_v18, -1.0  ;;  %v1020_v44 = vld [vmem:[%s3021_s2 + $0x8] sm:$0xff] }
 0x10d   : > { %vm2645_vm5 = vmor %vm2599_vm4, %vm3187_vm1  ;;  %vm3190_vm15 = vcmp.eq.f32.partialorder %v2252_v36, -1.0  ;;  %v3192_v6 = vmov 0  ;;  %v717_v14 = vmul.f32 %v701_v23, %v2531_v55  ;;  %v558_v19 = vadd.f32 0.008332161, %v542_v51 }
 0x10e   : > { %vm3191_vm9 = vmmov %vm3184_vm0  ;;  %v670_v17 = vadd.f32 -0.0013887316, %v654_v33  ;;  %v967_v56 = vsub.f32 0.0, %v935_v54  ;;  %v2659_v18 = vadd.f32 %v620_v60, %v2461_v32  ;;  %v2661_v3 = vadd.f32 1.0, %v748_v15 }
 0x10f   : > { %vm2653_vm13 = vmor %vm3191_vm9, %vm3190_vm15  ;;  %vm3194_vm4 = vcmp.eq.f32.partialorder %v2252_v36, -2.0  ;;  %v621_v16 = vmul.f32 %v605_v41, %v2511_v59  ;;  %v936_v23 = vsel %vm1999_vm12, %v1993_v28, %v1991_v27  ;;  %vm3197_vm15 = vcmp.eq.f32.partialorder %v1904_v61, -1.0 }
 0x110   : > { %v3193_v6 = vsel %vm2653_vm13, 4294967295, %v3192_v6  ;;  %vm2667_vm1 = vmor %vm2627_vm6, %vm3194_vm4  ;;  %v733_v60 = vadd.f32 -0.5, %v717_v14  ;;  %v574_v52 = vmul.f32 %v558_v19, %v2612_v20  ;;  %v686_v51 = vmul.f32 %v670_v17, %v2612_v20  ;;  %v3289_v19 = vld [vmem:[#allocation17_spill] sm:$0xff] }
 0x111   : > { %vm2680_vm9 = vmor %vm2619_vm14, %vm3197_vm15  ;;  %v983_v33 = vsel %vm2580_vm7, %v967_v56, %v935_v54  ;;  %vm3200_vm6 = vcmp.eq.f32.partialorder %v1906_v62, -2.0  ;;  %vm3201_vm12 = vcmp.eq.f32.partialorder %v1906_v62, 2.0  ;;  %v940_v27 = vsel %vm2653_vm13, %v2659_v18, %v2661_v3 }
 0x112   : > { %vm2692_vm4 = vmor %vm3201_vm12, %vm3200_vm6  ;;  %vm3204_vm14 = vcmp.eq.f32.partialorder %v2377_v50, 2.0  ;;  %vm3205_vm15 = vcmp.eq.f32.partialorder %v2377_v50, 1.0  ;;  %1068 = vmatpush.msra.mxu0 %v983_v33  ;;  %v968_v58 = vsub.f32 0.0, %v936_v23  ;;  %v988_v47 = vsub.f32 0.0, %v940_v27 }
 0x113   : > { %vm2704_vm0 = vmor %vm3205_vm15, %vm3204_vm14  ;;  %v749_v37 = vmul.f32 %v733_v60, %v2531_v55  ;;  %v590_v54 = vadd.f32 -0.16666655, %v574_v52  ;;  %v702_v15 = vadd.f32 0.041666646, %v686_v51  ;;  %vm3208_vm12 = vcmp.eq.f32.partialorder %v1850_v10, -2.0  ;;  %v3245_v52 = vld [vmem:[#allocation8_spill] sm:$0xff] }
 0x114   : > { %vm3209_vm2 = vcmp.eq.f32.partialorder %v1850_v10, 2.0  ;;  %v2720_v14 = vadd.f32 %v621_v16, %v2511_v59  ;;  %vm3212_vm14 = vcmp.eq.f32.partialorder %v2377_v50, -1.0  ;;  %v937_v55 = vsel %vm2042_vm11, %v2036_v40, %v2034_v29  ;;  %v3264_v29 = vld [vmem:[#allocation11_spill] sm:$0xff] }
 0x115   : > { %vm2715_vm13 = vmor %vm3209_vm2, %vm3208_vm12  ;;  %v931_v59 = vsel %vm2116_vm8, %v2110_v26, %v2108_v25  ;;  %vm3215_vm2 = vcmp.eq.f32.partialorder %v1848_v9, -1.0  ;;  %v1004_v17 = vsel %vm2667_vm1, %v988_v47, %v940_v27  ;;  %v2749_v56 = vadd.f32 1.0, %v749_v37  ;;  %v3252_v47 = vld [vmem:[#allocation13_spill] sm:$0xff]  ;;  %v3254_v37 = vld [vmem:[#allocation16_spill] sm:$0xff] }
 0x116   : > { %vm2726_vm7 = vmor %vm3205_vm15, %vm3212_vm14  ;;  %vm3218_vm11 = vcmp.eq.f32.partialorder %v2377_v50, -2.0  ;;  %v606_v9 = vmul.f32 %v590_v54, %v2612_v20  ;;  %v718_v40 = vmul.f32 %v702_v15, %v2612_v20  ;;  %vm3221_vm8 = vcmp.eq.f32.partialorder %v1906_v62, -1.0  ;;  %1096 = vmatpush.msra.mxu1 %v1004_v17  ;;  %v3263_v17 = vld [vmem:[#allocation10_spill] sm:$0xff]  ;;  %v1031_v15 = vpop.permute.xlu1 %1030 }
 0x117   : > { %vm2743_vm12 = vmor %vm2588_vm10, %vm3215_vm2  ;;  %v984_v25 = vsel %vm2645_vm5, %v968_v58, %v936_v23  ;;  %v963_v26 = vsub.f32 0.0, %v931_v59  ;;  %v932_v31 = vsel %vm2202_vm3, %v2191_v39, %v2189_v34  ;;  %vm3225_vm1 = vcmp.eq.f32.partialorder %v1850_v10, -1.0 }
 0x118   : > { %vm2755_vm14 = vmor %vm2704_vm0, %vm3218_vm11  ;;  %vm3224_vm0 = vnez %v3094_v49  ;;  %v941_v7 = vsel %vm2726_vm7, %v2720_v14, %v2749_v56  ;;  %v622_v34 = vmul.f32 %v606_v9, %v2574_v38  ;;  %v734_v39 = vadd.f32 -0.5, %v718_v40  ;;  %1097 = vmatpush.msra.mxu1 %v984_v25 }
 0x119   : > { %vm2765_vm10 = vmor %vm2692_vm4, %vm3221_vm8  ;;  %v933_v62 = vsel %vm3224_vm0, %v2235_v22, %v2233_v5  ;;  %vm3228_vm3 = vcmp.eq.f32.partialorder %v2440_v0, 2.0  ;;  %vm3229_vm5 = vcmp.eq.f32.partialorder %v2440_v0, 1.0  ;;  %v964_v35 = vsub.f32 0.0, %v932_v31 }
 0x11a   : > { %vm2783_vm4 = vmor %vm2715_vm13, %vm3225_vm1  ;;  %v989_v5 = vsub.f32 0.0, %v941_v7  ;;  %v969_v22 = vsub.f32 0.0, %v937_v55  ;;  %vm3232_vm13 = vnez %v3142_v4  ;;  %vm3233_vm2 = vcmp.eq.f32.partialorder %v1908_v63, -2.0 }
 0x11b   : > { %vm2796_vm15 = vmor %vm3229_vm5, %vm3228_vm3  ;;  %v979_v49 = vsel %vm3232_vm13, %v963_v26, %v931_v59  ;;  %vm3234_vm11 = vcmp.eq.f32.partialorder %v1908_v63, 2.0  ;;  %vm3237_vm0 = vcmp.eq.f32.partialorder %v1852_v11, -2.0  ;;  %vm3238_vm1 = vcmp.eq.f32.partialorder %v1852_v11, 2.0  ;;  %v3262_v59 = vld [vmem:[#allocation9_spill] sm:$0xff] }
 0x11c   : > { %vm2806_vm8 = vmor %vm3234_vm11, %vm3233_vm2  ;;  %v750_v60 = vmul.f32 %v734_v39, %v2612_v20  ;;  %vm3241_vm5 = vcmp.eq.f32.partialorder %v2440_v0, -1.0  ;;  %vm3242_vm13 = vcmp.eq.f32.partialorder %v2440_v0, 1.0  ;;  %vm3246_vm2 = vnez %v3245_v52  ;;  %1069 = vmatpush.msra.mxu0 %v979_v49 }
 0x11d   : > { %vm2814_vm3 = vmor %vm3238_vm1, %vm3237_vm0  ;;  %v938_v51 = vsel %vm3246_vm2, %v2078_v42, %v2076_v12  ;;  %v980_v33 = vsel %vm2680_vm9, %v964_v35, %v932_v31  ;;  %v1005_v20 = vsel %vm2755_vm14, %v989_v5, %v941_v7  ;;  %v638_v61 = vadd.f32 %v622_v34, %v2574_v38  ;;  %v3250_v12 = vld [vmem:[#allocation12_spill] sm:$0xff]  ;;  %v3253_v38 = vld [vmem:[#allocation14_spill] sm:$0xff] }
 0x11e   : > { %vm2823_vm6 = vmor %vm3242_vm13, %vm3241_vm5  ;;  %vm3247_vm11 = vcmp.eq.f32.partialorder %v2440_v0, -2.0  ;;  %1098 = vmatpush.msra.mxu1 %v980_v33  ;;  %v965_v28 = vsub.f32 0.0, %v933_v62  ;;  %vm3251_vm1 = vnez %v3250_v12  ;;  %1125 = vmatpush.msra.mxu2 %v1005_v20  ;;  %v766_v32 = vadd.f32 1.0, %v750_v60  ;;  %v1041_v12 = vpop.permute.xlu2 %1040 }
 0x11f   : > { %vm2840_vm0 = vmor %vm2796_vm15, %vm3247_vm11  ;;  %v927_v42 = vsel %vm3251_vm1, %v2320_v13, %v2318_v21  ;;  %vm3255_vm9 = vnez %v3254_v37  ;;  %vm3256_vm14 = vcmp.eq.f32.partialorder %v1852_v11, -1.0  ;;  %vm3259_vm5 = vnez %v3146_v24  ;;  %v3260_v13 = vld [vmem:[#allocation15_spill] sm:$0xff] }
 0x120   : > { %v959_v58 = vsub.f32 0.0, %v927_v42  ;;  %v928_v54 = vsel %vm3255_vm9, %v3253_v38, %v3252_v47  ;;  %vm2856_vm15 = vmor %vm2814_vm3, %vm3256_vm14  ;;  %v929_v21 = vsel %vm3259_vm5, %v2472_v53, %v2470_v2  ;;  %vm3261_vm13 = vnez %v3260_v13 }
 0x121   : > { %v985_v41 = vsel %vm3261_vm13, %v969_v22, %v937_v55  ;;  %vm3265_vm2 = vnez %v3264_v29  ;;  %v960_v11 = vsub.f32 0.0, %v928_v54  ;;  %v961_v40 = vsub.f32 0.0, %v929_v21 }
 0x122   : > { %v934_v9 = vsel %vm3265_vm2, %v3263_v17, %v3262_v59  ;;  %vm3266_vm3 = vcmp.eq.f32.partialorder %v1887_v46, -2.0  ;;  %vm3267_vm11 = vcmp.eq.f32.partialorder %v1887_v46, 2.0  ;;  %v942_v2 = vsel %vm2823_vm6, %v638_v61, %v766_v32  ;;  %1126 = vmatpush.msra.mxu2 %v985_v41 }
 0x123   : > { %vm2874_vm1 = vmor %vm3267_vm11, %vm3266_vm3  ;;  %v970_v53 = vsub.f32 0.0, %v938_v51  ;;  %v975_v24 = vsel %vm2743_vm12, %v959_v58, %v927_v42  ;;  %vm3270_vm9 = vcmp.eq.f32.partialorder %v2134_v30, -2.0  ;;  %vm3271_vm14 = vcmp.eq.f32.partialorder %v2134_v30, 2.0 }
 0x124   : > { %vm2886_vm5 = vmor %vm3271_vm14, %vm3270_vm9  ;;  %vm3274_vm13 = vnez %v3162_v43  ;;  %v990_v31 = vsub.f32 0.0, %v942_v2  ;;  %v981_v7 = vsel %vm2765_vm10, %v965_v28, %v933_v62  ;;  %1070 = vmatpush.msra.mxu0 %v975_v24  ;;  %v976_v16 = vsel %vm2783_vm4, %v960_v11, %v928_v54 }
 0x125   : > { %v923_v26 = vsel %vm3274_vm13, %v2549_v8, %v2547_v48  ;;  %vm3275_vm12 = vcmp.eq.f32.partialorder %v2252_v36, -2.0  ;;  %vm3276_vm2 = vcmp.eq.f32.partialorder %v2252_v36, 2.0  ;;  %1127 = vmatpush.msra.mxu2 %v981_v7  ;;  %v966_v43 = vsub.f32 0.0, %v934_v9  ;;  %1099 = vmatpush.msra.mxu1 %v976_v16  ;;  %v3279_v48 = vld [vmem:[#allocation18_spill] sm:$0xff]  ;;  %v3280_v8 = vld [vmem:[#allocation19_spill] sm:$0xff] }
 0x126   : > { %v955_v34 = vsub.f32 0.0, %v923_v26  ;;  %vm2902_vm3 = vmor %vm3276_vm2, %vm3275_vm12  ;;  %vm3281_vm10 = vnez %v3280_v8  ;;  %vm3282_vm4 = vnez %v3193_v6  ;;  %vm3283_vm11 = vcmp.eq.f32.partialorder %v2377_v50, -2.0  ;;  %v1026_v17 = vpop.permute.xlu2 %1025 }
 0x127   : > { %v930_v45 = vsel %vm3281_vm10, %v3279_v48, %v2506_v57  ;;  %v924_v62 = vsel %vm3282_vm4, %v2661_v3, %v2659_v18  ;;  %vm3284_vm9 = vcmp.eq.f32.partialorder %v2377_v50, 2.0  ;;  %v925_v10 = vsel %vm2726_vm7, %v2749_v56, %v2720_v14 }
 0x128   : > { %vm2918_vm14 = vmor %vm3284_vm9, %vm3283_vm11  ;;  %v1006_v57 = vsel %vm2840_vm0, %v990_v31, %v942_v2  ;;  %v977_v6 = vsel %vm2856_vm15, %v961_v40, %v929_v21  ;;  %vm3287_vm13 = vcmp.eq.f32.partialorder %v2134_v30, -1.0  ;;  %v956_v18 = vsub.f32 0.0, %v924_v62  ;;  %v1019_v30 = vld [vmem:[%s3021_s2] sm:$0xff] }
 0x129   : > { %vm875_vm12 = vmor %vm2886_vm5, %vm3287_vm13  ;;  %v957_v3 = vsub.f32 0.0, %v925_v10  ;;  %1154 = vmatpush.msra.mxu3 %v1006_v57  ;;  %1128 = vmatpush.msra.mxu2 %v977_v6  ;;  %vm3288_vm2 = vcmp.eq.f32.partialorder %v2252_v36, -1.0  ;;  %v926_v14 = vsel %vm2823_vm6, %v766_v32, %v638_v61  ;;  %vm1043_vm0 = vcmask 523264   ;;  %v1036_v32 = vpop.permute.xlu0 %1035 }
 0x12a   : > { %v971_v35 = vsel %vm875_vm12, %v955_v34, %v923_v26  ;;  %vm876_vm7 = vmor %vm2902_vm3, %vm3288_vm2  ;;  %vm3290_vm15 = vnez %v3289_v19  ;;  %v962_v5 = vsub.f32 0.0, %v930_v45  ;;  %vm3291_vm5 = vcmp.eq.f32.partialorder %v2377_v50, -1.0  ;;  %v1188_v34 = vld [vmem:[#allocation4] sm:$0xff] }
 0x12b   : > { %v986_v56 = vsel %vm3290_vm15, %v970_v53, %v938_v51  ;;  %1071 = vmatpush.msra.mxu0 %v971_v35  ;;  %v972_v22 = vsel %vm876_vm7, %v956_v18, %v924_v62  ;;  %vm877_vm10 = vmor %vm2918_vm14, %vm3291_vm5  ;;  %vm3292_vm3 = vcmp.eq.f32.partialorder %v1908_v63, -1.0  ;;  %vm3293_vm4 = vcmp.eq.f32.partialorder %v2440_v0, -2.0 }
 0x12c   : > { %1155 = vmatpush.msra.mxu3 %v986_v56  ;;  %vm886_vm6 = vmor %vm2806_vm8, %vm3292_vm3  ;;  %1100 = vmatpush.msra.mxu1 %v972_v22  ;;  %v973_v36 = vsel %vm877_vm10, %v957_v3, %v925_v10  ;;  %vm3294_vm11 = vcmp.eq.f32.partialorder %v2440_v0, 2.0  ;;  %v958_v23 = vsub.f32 0.0, %v926_v14  ;;  %vm3295_vm14 = vcmp.eq.f32.partialorder %v1887_v46, -1.0  ;;  %v1021_v46 = vld [vmem:[%s3021_s2 + $0x10] sm:$0xff]  ;;  %v1191_v22 = vld [vmem:[#allocation4 + $0x18] sm:$0xff] }
 0x12d   : > { %v982_v49 = vsel %vm886_vm6, %v966_v43, %v934_v9  ;;  %1129 = vmatpush.msra.mxu2 %v973_v36  ;;  %vm862_vm9 = vmor %vm3294_vm11, %vm3293_vm4  ;;  %1556 = vmatmul.msk.f32.vlgmr.msra.gmra.mxu0 %vm1043_vm0, %v1019_v30  ;;  %vm3296_vm8 = vcmp.eq.f32.partialorder %v2440_v0, -1.0  ;;  %v1022_v0 = vld [vmem:[%s3021_s2 + $0x18] sm:$0xff]  ;;  %vm1457_vm2 = vcmask 1041408   ;;  %vm1459_vm7 = vcmask 1045508  }
 0x12e   : > { %1156 = vmatpush.msra.mxu3 %v982_v49  ;;  %vm882_vm13 = vmor %vm2874_vm1, %vm3295_vm14  ;;  %1560 = vmatmul.msk.f32.vlgmr.msra.gmra.mxu1 %vm1043_vm0, %v1019_v30  ;;  %vm1212_vm1 = vcmask 261120  }
 0x12f   : > { %v978_v63 = vsel %vm882_vm13, %v962_v5, %v930_v45  ;;  %1564 = vmatmul.msk.f32.vlgmr.msra.gmra.mxu2 %vm1043_vm0, %v1019_v30  ;;  %vm878_vm12 = vmor %vm862_vm9, %vm3296_vm8  ;;  %v1190_v5 = vld [vmem:[#allocation4 + $0x10] sm:$0xff] }
 0x130   : > { %1157 = vmatpush.msra.mxu3 %v978_v63  ;;  %v974_v50 = vsel %vm878_vm12, %v958_v23, %v926_v14 }
 0x132   : > { %1158 = vmatpush.msra.mxu3 %v974_v50 }
 0x133   : > { %1568 = vmatmul.msk.f32.vlgmr.msra.gmra.mxu3 %vm1043_vm0, %v1019_v30  ;;  %v1189_v30 = vld [vmem:[#allocation4 + $0x8] sm:$0xff] }
 0x135   : > { %1557 = vmatmul.msk.f32.gmra.mxu0 %vm1043_vm0, %v1020_v44 }
 0x136   : > { %1561 = vmatmul.msk.f32.gmra.mxu1 %vm1043_vm0, %v1020_v44 }
 0x137   : > { %1565 = vmatmul.msk.f32.gmra.mxu2 %vm1043_vm0, %v1020_v44 }
 0x13b   : > { %1569 = vmatmul.msk.f32.gmra.mxu3 %vm1043_vm0, %v1020_v44 }
 0x13d   : > { %1558 = vmatmul.msk.f32.gmra.mxu0 %vm1043_vm0, %v1021_v46 }
 0x13e   : > { %1562 = vmatmul.msk.f32.gmra.mxu1 %vm1043_vm0, %v1021_v46 }
 0x13f   : > { %1566 = vmatmul.msk.f32.gmra.mxu2 %vm1043_vm0, %v1021_v46 }
 0x143   : > { %1570 = vmatmul.msk.f32.gmra.mxu3 %vm1043_vm0, %v1021_v46 }
 0x145   : > { %1559 = vmatmul.msk.f32.gmra.mxu0 %vm1043_vm0, %v1022_v0 }
 0x146   : > { %1563 = vmatmul.msk.f32.gmra.mxu1 %vm1043_vm0, %v1022_v0 }
 0x147   : > { %1567 = vmatmul.msk.f32.gmra.mxu2 %vm1043_vm0, %v1022_v0 }
 0x14b   : > { %1571 = vmatmul.msk.f32.gmra.mxu3 %vm1043_vm0, %v1022_v0  ;;  %v1210_v0 = vpop.permute.xlu0 %1209  ;;  %vm1461_vm0 = vcmask 1043456  }
 0x1aa   : > { %v1073_v60 = vpop.f32.mrf.mxu0 }
 0x1ab   : > { %v1102_v4 = vpop.f32.mrf.mxu1  ;;  %v1074_v40 = vadd.f32 %v1073_v60, %v1026_v17 }
 0x1ac   : > { %v1103_v2 = vadd.f32 %v1102_v4, %v1026_v17 }
 0x1ad   : > { %v1172_v31 = vmax.f32 %v1074_v40, 0.0 }
 0x1ae   : > { %v1173_v39 = vmax.f32 %v1103_v2, 0.0 }
 0x1b2   : > { %v1131_v52 = vpop.f32.mrf.mxu2  ;;  %v1076_v51 = vpop.f32.mrf.mxu0 }
 0x1b3   : > { %v1105_v33 = vpop.f32.mrf.mxu1  ;;  %v1077_v41 = vadd.f32 %v1076_v51, %v1031_v15  ;;  %v1132_v45 = vadd.f32 %v1131_v52, %v1026_v17  ;;  %v1205_v52 = vpop.permute.xlu1 %1204 }
 0x1b4   : > { %v1106_v29 = vadd.f32 %v1105_v33, %v1031_v15 }
 0x1b5   : > { %v1176_v24 = vmax.f32 %v1077_v41, 0.0  ;;  %v1174_v3 = vmax.f32 %v1132_v45, 0.0 }
 0x1b6   : > { %v1160_v20 = vpop.f32.mrf.mxu3  ;;  %v1177_v55 = vmax.f32 %v1106_v29, 0.0 }
 0x1b7   : > { %v1161_v35 = vadd.f32 %v1160_v20, %v1026_v17 }
 0x1b9   : > { %v1175_v56 = vmax.f32 %v1161_v35, 0.0 }
 0x1ba   : > { %v1134_v61 = vpop.f32.mrf.mxu2  ;;  %v1079_v27 = vpop.f32.mrf.mxu0 }
 0x1bb   : > { %v1108_v28 = vpop.f32.mrf.mxu1  ;;  %v1080_v38 = vadd.f32 %v1079_v27, %v1036_v32  ;;  %v1135_v43 = vadd.f32 %v1134_v61, %v1031_v15  ;;  %v1200_v27 = vpop.permute.xlu2 %1199 }
 0x1bc   : > { %v1109_v21 = vadd.f32 %v1108_v28, %v1036_v32 }
 0x1bd   : > { %v1180_v25 = vmax.f32 %v1080_v38, 0.0  ;;  %v1178_v57 = vmax.f32 %v1135_v43, 0.0 }
 0x1be   : > { %v1163_v42 = vpop.f32.mrf.mxu3  ;;  %v1181_v53 = vmax.f32 %v1109_v21, 0.0 }
 0x1bf   : > { %v1164_v6 = vadd.f32 %v1163_v42, %v1031_v15 }
 0x1c1   : > { %v1179_v19 = vmax.f32 %v1164_v6, 0.0  ;;  %v1361_v6 = vpop.permute.xlu1 %1360 }
 0x1c2   : > { %v1137_v58 = vpop.f32.mrf.mxu2  ;;  %v1082_v47 = vpop.f32.mrf.mxu0 }
 0x1c3   : > { %v1083_v37 = vadd.f32 %v1082_v47, %v1041_v12  ;;  %v1111_v54 = vpop.f32.mrf.mxu1  ;;  %v1138_v7 = vadd.f32 %v1137_v58, %v1036_v32  ;;  %v1195_v47 = vpop.permute.xlu0 %1194 }
 0x1c4   : > { %v1112_v13 = vadd.f32 %v1111_v54, %v1041_v12 }
 0x1c5   : > { %v1184_v59 = vmax.f32 %v1083_v37, 0.0  ;;  %v1182_v62 = vmax.f32 %v1138_v7, 0.0 }
 0x1c6   : > { %v1166_v9 = vpop.f32.mrf.mxu3  ;;  %v1185_v11 = vmax.f32 %v1112_v13, 0.0 }
 0x1c7   : > { %1237 = vmatpush.msrb.mxu0 %v1184_v59  ;;  %v1167_v1 = vadd.f32 %v1166_v9, %v1036_v32  ;;  %v1357_v9 = vld [vmem:[%s3023_s4] sm:$0x3] }
 0x1c8   : > { %1266 = vmatpush.msrb.mxu1 %v1185_v11 }
 0x1c9   : > { %1238 = vmatpush.msrb.mxu0 %v1180_v25  ;;  %v1183_v14 = vmax.f32 %v1167_v1, 0.0 }
 0x1ca   : > { %v1140_v26 = vpop.f32.mrf.mxu2  ;;  %1267 = vmatpush.msrb.mxu1 %v1181_v53 }
 0x1cb   : > { %v1141_v16 = vadd.f32 %v1140_v26, %v1041_v12  ;;  %1239 = vmatpush.msrb.mxu0 %v1176_v24 }
 0x1cc   : > { %1268 = vmatpush.msrb.mxu1 %v1177_v55 }
 0x1cd   : > { %v1186_v48 = vmax.f32 %v1141_v16, 0.0  ;;  %1240 = vmatpush.msrb.mxu0 %v1172_v31 }
 0x1ce   : > { %v1169_v8 = vpop.f32.mrf.mxu3  ;;  %1269 = vmatpush.msrb.mxu1 %v1173_v39  ;;  %1572 = vmatmul.msk.f32.vlgmr.msrb.gmra.mxu0 %vm1212_vm1, %v1188_v34 }
 0x1cf   : > { %v1170_v10 = vadd.f32 %v1169_v8, %v1041_v12  ;;  %1295 = vmatpush.msrb.mxu2 %v1186_v48  ;;  %1576 = vmatmul.msk.f32.vlgmr.msrb.gmra.mxu1 %vm1212_vm1, %v1188_v34 }
 0x1d1   : > { %v1187_v18 = vmax.f32 %v1170_v10, 0.0  ;;  %1296 = vmatpush.msrb.mxu2 %v1182_v62 }
 0x1d3   : > { %1324 = vmatpush.msrb.mxu3 %v1187_v18  ;;  %1297 = vmatpush.msrb.mxu2 %v1178_v57 }
 0x1d5   : > { %1325 = vmatpush.msrb.mxu3 %v1183_v14  ;;  %1298 = vmatpush.msrb.mxu2 %v1174_v3 }
 0x1d6   : > { %1580 = vmatmul.msk.f32.vlgmr.msrb.gmra.mxu2 %vm1212_vm1, %v1188_v34  ;;  %1573 = vmatmul.msk.f32.gmra.mxu0 %vm1212_vm1, %v1189_v30 }
 0x1d7   : > { %1326 = vmatpush.msrb.mxu3 %v1179_v19  ;;  %1577 = vmatmul.msk.f32.gmra.mxu1 %vm1212_vm1, %v1189_v30 }
 0x1d9   : > { %1327 = vmatpush.msrb.mxu3 %v1175_v56 }
 0x1da   : > { %1584 = vmatmul.msk.f32.vlgmr.msrb.gmra.mxu3 %vm1212_vm1, %v1188_v34 }
 0x1de   : > { %1581 = vmatmul.msk.f32.gmra.mxu2 %vm1212_vm1, %v1189_v30  ;;  %1574 = vmatmul.msk.f32.gmra.mxu0 %vm1212_vm1, %v1190_v5 }
 0x1df   : > { %1578 = vmatmul.msk.f32.gmra.mxu1 %vm1212_vm1, %v1190_v5 }
 0x1e2   : > { %1585 = vmatmul.msk.f32.gmra.mxu3 %vm1212_vm1, %v1189_v30 }
 0x1e6   : > { %1582 = vmatmul.msk.f32.gmra.mxu2 %vm1212_vm1, %v1190_v5  ;;  %1575 = vmatmul.msk.f32.gmra.mxu0 %vm1212_vm1, %v1191_v22 }
 0x1e7   : > { %1579 = vmatmul.msk.f32.gmra.mxu1 %vm1212_vm1, %v1191_v22 }
 0x1ea   : > { %1586 = vmatmul.msk.f32.gmra.mxu3 %vm1212_vm1, %v1190_v5 }
 0x1ee   : > { %1583 = vmatmul.msk.f32.gmra.mxu2 %vm1212_vm1, %v1191_v22 }
 0x1f2   : > { %1587 = vmatmul.msk.f32.gmra.mxu3 %vm1212_vm1, %v1191_v22 }
 0x24b   : > { %v1242_v36 = vpop.f32.mrf.mxu0 }
 0x24c   : > { %v1271_v49 = vpop.f32.mrf.mxu1  ;;  %v1243_v54 = vadd.f32 %v1242_v36, %v1195_v47 }
 0x24d   : > { %v1272_v21 = vadd.f32 %v1271_v49, %v1195_v47 }
 0x24e   : > { %v1341_v29 = vmax.f32 %v1243_v54, 0.0 }
 0x24f   : > { %v1342_v11 = vmax.f32 %v1272_v21, 0.0 }
 0x253   : > { %v1245_v23 = vpop.f32.mrf.mxu0 }
 0x254   : > { %v1274_v63 = vpop.f32.mrf.mxu1  ;;  %v1246_v32 = vadd.f32 %v1245_v23, %v1200_v27 }
 0x255   : > { %v1275_v38 = vadd.f32 %v1274_v63, %v1200_v27 }
 0x256   : > { %v1345_v59 = vmax.f32 %v1246_v32, 0.0 }
 0x257   : > { %v1346_v17 = vmax.f32 %v1275_v38, 0.0 }
 0x259   : > { %v1300_v50 = vpop.f32.mrf.mxu2 }
 0x25a   : > { %v1301_v31 = vadd.f32 %v1300_v50, %v1195_v47 }
 0x25b   : > { %v1248_v44 = vpop.f32.mrf.mxu0 }
 0x25c   : > { %v1277_v46 = vpop.f32.mrf.mxu1  ;;  %v1249_v33 = vadd.f32 %v1248_v44, %v1205_v52  ;;  %v1343_v8 = vmax.f32 %v1301_v31, 0.0 }
 0x25d   : > { %v1329_v60 = vpop.f32.mrf.mxu3  ;;  %v1278_v28 = vadd.f32 %v1277_v46, %v1205_v52 }
 0x25e   : > { %v1349_v15 = vmax.f32 %v1249_v33, 0.0  ;;  %v1330_v45 = vadd.f32 %v1329_v60, %v1195_v47 }
 0x25f   : > { %v1350_v13 = vmax.f32 %v1278_v28, 0.0 }
 0x260   : > { %v1344_v10 = vmax.f32 %v1330_v45, 0.0 }
 0x261   : > { %v1303_v4 = vpop.f32.mrf.mxu2 }
 0x262   : > { %v1304_v24 = vadd.f32 %v1303_v4, %v1200_v27 }
 0x263   : > { %v1251_v51 = vpop.f32.mrf.mxu0 }
 0x264   : > { %v1252_v20 = vadd.f32 %v1251_v51, %v1210_v0  ;;  %v1280_v61 = vpop.f32.mrf.mxu1  ;;  %v1347_v39 = vmax.f32 %v1304_v24, 0.0 }
 0x265   : > { %v1332_v12 = vpop.f32.mrf.mxu3  ;;  %v1281_v42 = vadd.f32 %v1280_v61, %v1210_v0 }
 0x266   : > { %v1353_v58 = vmax.f32 %v1252_v20, 0.0  ;;  %v1333_v43 = vadd.f32 %v1332_v12, %v1200_v27 }
 0x267   : > { %v1354_v37 = vmax.f32 %v1281_v42, 0.0 }
 0x268   : > { %1378 = vmatpush.msra.mxu0 %v1353_v58  ;;  %v1348_v1 = vmax.f32 %v1333_v43, 0.0 }
 0x269   : > { %v1306_v41 = vpop.f32.mrf.mxu2  ;;  %1398 = vmatpush.msra.mxu1 %v1354_v37 }
 0x26a   : > { %1379 = vmatpush.msra.mxu0 %v1349_v15  ;;  %v1307_v2 = vadd.f32 %v1306_v41, %v1205_v52 }
 0x26b   : > { %1399 = vmatpush.msra.mxu1 %v1350_v13 }
 0x26c   : > { %1380 = vmatpush.msra.mxu0 %v1345_v59  ;;  %v1351_v7 = vmax.f32 %v1307_v2, 0.0 }
 0x26d   : > { %v1335_v40 = vpop.f32.mrf.mxu3  ;;  %1400 = vmatpush.msra.mxu1 %v1346_v17 }
 0x26e   : > { %1381 = vmatpush.msra.mxu0 %v1341_v29  ;;  %v1336_v16 = vadd.f32 %v1335_v40, %v1205_v52 }
 0x26f   : > { %1401 = vmatpush.msra.mxu1 %v1342_v11  ;;  %1588 = vmatmul.msk.f32.vlgmr.msra.gmra.mxu0 %vm1212_vm1, %v1357_v9 }
 0x270   : > { %1589 = vmatmul.msk.f32.vlgmr.msra.gmra.mxu1 %vm1212_vm1, %v1357_v9  ;;  %v1352_v62 = vmax.f32 %v1336_v16, 0.0 }
 0x271   : > { %v1309_v25 = vpop.f32.mrf.mxu2 }
 0x272   : > { %v1310_v53 = vadd.f32 %v1309_v25, %v1210_v0 }
 0x274   : > { %v1355_v55 = vmax.f32 %v1310_v53, 0.0 }
 0x275   : > { %v1338_v26 = vpop.f32.mrf.mxu3 }
 0x276   : > { %v1339_v34 = vadd.f32 %v1338_v26, %v1210_v0  ;;  %1418 = vmatpush.msra.mxu2 %v1355_v55 }
 0x278   : > { %v1356_v48 = vmax.f32 %v1339_v34, 0.0  ;;  %1419 = vmatpush.msra.mxu2 %v1351_v7 }
 0x27a   : > { %1438 = vmatpush.msra.mxu3 %v1356_v48  ;;  %1420 = vmatpush.msra.mxu2 %v1347_v39 }
 0x27c   : > { %1439 = vmatpush.msra.mxu3 %v1352_v62  ;;  %1421 = vmatpush.msra.mxu2 %v1343_v8 }
 0x27d   : > { %1590 = vmatmul.msk.f32.vlgmr.msra.gmra.mxu2 %vm1212_vm1, %v1357_v9 }
 0x27e   : > { %1440 = vmatpush.msra.mxu3 %v1348_v1 }
 0x280   : > { %1441 = vmatpush.msra.mxu3 %v1344_v10 }
 0x281   : > { %1591 = vmatmul.msk.f32.vlgmr.msra.gmra.mxu3 %vm1212_vm1, %v1357_v9 }
 0x2ec   : > { %v1383_v14 = vpop.f32.mrf.mxu0 }
 0x2ed   : > { %v1403_v57 = vpop.f32.mrf.mxu1  ;;  %v1384_v19 = vadd.f32 %v1383_v14, %v1361_v6 }
 0x2ee   : > { %v1404_v18 = vadd.f32 %v1403_v57, %v1361_v6 }
 0x2f0   : > { %1629 = vtanh.f32 %v1404_v18 }
 0x2f6   : > { %v1630_v5 = vpop.eup %1629 }
 0x2f7   : > { %v1454_v36 = vrot.slane %v1630_v5, 6 }
 0x300   : > { %v1423_v3 = vpop.f32.mrf.mxu2 }
 0x301   : > { %v1424_v35 = vadd.f32 %v1423_v3, %v1361_v6 }
 0x303   : > { %1631 = vtanh.f32 %v1424_v35 }
 0x304   : > { %v1443_v30 = vpop.f32.mrf.mxu3 }
 0x305   : > { %v1444_v56 = vadd.f32 %v1443_v30, %v1361_v6 }
 0x307   : > { %1633 = vtanh.f32 %v1444_v56 }
 0x308   : > { %1635 = vtanh.f32 %v1384_v19 }
 0x309   : > { %v1632_v22 = vpop.eup %1631 }
 0x30a   : > { %v1455_v49 = vrot.slane %v1632_v22, 4 }
 0x30d   : > { %v1634_v23 = vpop.eup %1633 }
 0x30e   : > { %v1456_v63 = vrot.slane %v1634_v23, 2  ;;  %v1636_v50 = vpop.eup %1635 }
 0x30f   : > { %v1458_v44 = vsel %vm1457_vm2, %v1636_v50, %v1454_v36 }
 0x310   : > { %v1460_v46 = vsel %vm1459_vm7, %v1455_v49, %v1456_v63 }
 0x311   : > { %v1462_v0 = vsel %vm1461_vm0, %v1458_v44, %v1460_v46 }
 0x312   : > { %1464 = vst [vmem:[%s260_s27] sm:$0xff] %v1462_v0 }
 0x313 PF: > { %s17_s18 = sadd.s32 1, %s1711_s18  }
 0x314   : > { %p14_p7 = scmp.ge.s32.totalorder %s17_s18, 4  }
 0x316   :  { %16 = sbr.rel (!%p14_p7) target bundleno = 2 (0x2), region = 79 }
 0x31b   :  { %1487 = vsyncpa [#allocation3], 1 }
 0x31c   :  { %1489 = vsyncpa [#allocation3 + $0x1], 1 }
 0x31d   :  { %1490 = vsyncpa [#allocation5], 1 }

</bundles_post_ra>
